<compile_context>
chip_gen: v7x
topology: tpu7x:2x2x1
jax: 0.10.0
libtpu: 0.0.40
codegen_flags: <defaults>
</compile_context>

<pallas_src>
import numpy as np
import jax
import jax.numpy as jnp
from jax.experimental import pallas as pl
from jax.experimental.pallas import tpu as pltpu


def _round_up(x, m):
    return ((x + m - 1) // m) * m


def _vmem_limit_bytes():
    # ~3/4 of physical VMEM: ~96 MiB on v5e/v6e (128 MiB), ~48 MiB on v7x (64 MiB/TC).
    try:
        cap = getattr(pltpu.get_tpu_info(), "vmem_capacity_bytes", 128 * 1024 * 1024)
    except Exception:
        cap = 128 * 1024 * 1024
    return int(max(32 * 1024 * 1024, min(96 * 1024 * 1024, (cap * 3) // 4)))


# --------------------------------------------------------------------------- #
# Fused kernel: mention pooling -> entity pooling (cached) -> pair gather -> MLP
# grid = (batch, pair_tile)
# --------------------------------------------------------------------------- #
def rrcs_fused_kernel(mid_ref, enc_ref, cls_ref, e2m_ref, hidx_ref, tidx_ref,
                      w1h_ref, w1t_ref, b1_ref, w2_ref, b2_ref,
                      out_ref, ent_ref):
    """Per-(batch, pair-tile) fused forward.

    mid_ref:  (1, 1, slen)   int32   mention id per token
    enc_ref:  (1, slen, F)   bf16    BERT output ++ type emb ++ id emb
    cls_ref:  (1, 1, F)      f32     [CLS] vector zero-padded to F
    e2m_ref:  (1, Ep, M1p)   bf16    BINARY entity->(cls,mention) incidence
                                     (row e == entity id e+1; zero padded)
    hidx_ref: (1, TP, 1)     int32   head-entity index per pair (k-1 remapped)
    tidx_ref: (1, TP, 1)     int32   tail-entity index per pair
    w1h_ref:  (F, F) bf16,  w1t_ref: (F, F) bf16,  b1_ref: (1, F) f32
    w2_ref:   (F, Rp) bf16, b2_ref:  (1, Rp) f32   (relation dim padded to 128)
    out_ref:  (1, TP, Rp)    f32     pair logits (padded)
    ent_ref:  (Ep, F)        bf16    VMEM scratch: per-batch entity bank
    """
    slen = enc_ref.shape[1]
    Ep, M1p = e2m_ref.shape[1], e2m_ref.shape[2]
    TP = hidx_ref.shape[1]

    # ---- per-batch pooling: only on the first pair tile of each batch ------ #
    @pl.when(pl.program_id(1) == 0)
    def _():
        enc = enc_ref[0]                       # (slen, F) bf16
        mid = mid_ref[0]                       # (1, slen) int32
        cls = cls_ref[0]                       # (1, F)    f32

        # mention pooling: binary select matmul (bf16-exact), mean applied in f32.
        m_iota = jax.lax.broadcasted_iota(jnp.int32, (M1p, slen), 0)
        hit = jnp.logical_and(m_iota == jnp.broadcast_to(mid, (M1p, slen)),
                              m_iota >= 1)
        sel = hit.astype(jnp.bfloat16)
        tot = jnp.sum(hit.astype(jnp.float32), axis=-1, keepdims=True)
        inv_m = pl.reciprocal(jnp.where(tot > 0, tot, 1.0), approx=True)  # EUP
        x = jnp.dot(sel, enc, preferred_element_type=jnp.float32) * inv_m  # (M1p, F)

        # row 0 of [cls ; mentions]
        row0 = (jax.lax.broadcasted_iota(jnp.int32, (M1p, 1), 0) == 0)
        xc = x + row0.astype(jnp.float32) * cls                            # (M1p, F)

        # entity pooling: binary incidence matmul, 1/n applied in f32 after.
        e2m = e2m_ref[0]                                                   # (Ep, M1p)
        cnt = jnp.sum(e2m.astype(jnp.float32), axis=-1, keepdims=True)
        inv_e = pl.reciprocal(jnp.where(cnt > 0, cnt, 1.0), approx=True)   # EUP
        ent = jnp.dot(e2m, xc.astype(jnp.bfloat16),
                      preferred_element_type=jnp.float32) * inv_e          # (Ep, F)
        ent_ref[...] = ent.astype(jnp.bfloat16)

    # ---- pair gather: in-kernel one-hot, single stacked MXU dot ------------ #
    hi = hidx_ref[0]                                        # (TP, 1) int32
    ti = tidx_ref[0]                                        # (TP, 1) int32
    e_iota = jax.lax.broadcasted_iota(jnp.int32, (TP, Ep), 1)
    hsel = (e_iota == hi).astype(jnp.bfloat16)              # (TP, Ep)
    tsel = (e_iota == ti).astype(jnp.bfloat16)              # (TP, Ep)
    sel_ht = jnp.concatenate([hsel, tsel], axis=0)          # (2*TP, Ep)
    ht_ent = jnp.dot(sel_ht, ent_ref[...],
                     preferred_element_type=jnp.float32)    # (2*TP, F)
    h_ent = ht_ent[:TP].astype(jnp.bfloat16)
    t_ent = ht_ent[TP:].astype(jnp.bfloat16)

    # ---- first_predict: split-weight Linear(2F->F) -> ReLU -> Linear(F->R) -- #
    z = (jnp.dot(h_ent, w1h_ref[...], preferred_element_type=jnp.float32)
         + jnp.dot(t_ent, w1t_ref[...], preferred_element_type=jnp.float32)
         + b1_ref[...])
    z = jnp.maximum(z, 0.0).astype(jnp.bfloat16)   # relu; dropout == identity (eval)
    out_ref[0] = (jnp.dot(z, w2_ref[...], preferred_element_type=jnp.float32)
                  + b2_ref[...])


def fused_rrcs_call(mid, enc_cat, cls_cat, e2m_pad, h_idx, t_idx,
                    w1h, w1t, b1, w2p, b2p, tile_p):
    bsz, slen, F = enc_cat.shape
    Ep, M1p = e2m_pad.shape[1], e2m_pad.shape[2]
    Pp = h_idx.shape[1]
    Rp = w2p.shape[1]
    n_ptiles = Pp // tile_p

    flops = 2 * bsz * (M1p * slen * F + Ep * M1p * F + 2 * Pp * Ep * F
                       + 2 * Pp * F * F + Pp * F * Rp)
    bytes_acc = (bsz * (4 * slen + 2 * slen * F + 4 * F + 2 * Ep * M1p
                        + 8 * Pp + 4 * Pp * Rp)
                 + 2 * (2 * F * F + F * Rp) + 4 * (F + Rp))

    def wspec(shape):  # grid-invariant weights: single-buffered
        return pl.BlockSpec(shape, lambda b, p: (0, 0),
                            pipeline_mode=pl.Buffered(1))

    return pl.pallas_call(
        rrcs_fused_kernel,
        out_shape=jax.ShapeDtypeStruct((bsz, Pp, Rp), jnp.float32),
        grid=(bsz, n_ptiles),
        in_specs=[
            pl.BlockSpec((1, 1, slen), lambda b, p: (b, 0, 0)),      # mention_id
            pl.BlockSpec((1, slen, F), lambda b, p: (b, 0, 0)),      # encoder_outputs
            pl.BlockSpec((1, 1, F), lambda b, p: (b, 0, 0)),         # sentence_cls
            pl.BlockSpec((1, Ep, M1p), lambda b, p: (b, 0, 0)),      # entity2mention
            pl.BlockSpec((1, tile_p, 1), lambda b, p: (b, p, 0)),    # head indices
            pl.BlockSpec((1, tile_p, 1), lambda b, p: (b, p, 0)),    # tail indices
            wspec((F, F)),                                           # w1[:F]
            wspec((F, F)),                                           # w1[F:]
            pl.BlockSpec((1, F), lambda b, p: (0, 0)),               # b1
            wspec((F, Rp)),                                          # w2 (padded)
            pl.BlockSpec((1, Rp), lambda b, p: (0, 0)),              # b2 (padded)
        ],
        out_specs=pl.BlockSpec((1, tile_p, Rp), lambda b, p: (b, p, 0)),
        scratch_shapes=[pltpu.VMEM((Ep, F), jnp.bfloat16)],          # entity bank
        compiler_params=pltpu.CompilerParams(
            dimension_semantics=("parallel", "arbitrary"),
            vmem_limit_bytes=_vmem_limit_bytes()),
        cost_estimate=pl.CostEstimate(flops=flops,
                                      transcendentals=bsz * (M1p + Ep),
                                      bytes_accessed=bytes_acc),
    )(mid, enc_cat, cls_cat, e2m_pad, h_idx, t_idx, w1h, w1t, b1, w2p, b2p)


# --------------------------------------------------------------------------- #
# Full forward (data-prep glue in plain JAX, fused hot path in Pallas)
# --------------------------------------------------------------------------- #
def rrcs_bert_forward(params, words, mask, entity_type, entity_id, mention_id,
                      entity2mention_table, h_t_pairs):
    # TODO(synk): stand-in for BertModel(input_ids, attention_mask).last_hidden_state
    enc = jnp.take(params["word_emb"], words, axis=0)            # (bsz, slen, H)
    del mask                                                     # only used inside real BERT
    sentence_cls = enc[:, 0, :]                                  # (bsz, H)

    type_e = jnp.take(params["entity_type_emb"], entity_type, axis=0)
    id_e = jnp.take(params["entity_id_emb"], entity_id, axis=0)
    enc_cat = jnp.concatenate([enc, type_e, id_e], axis=-1)      # (bsz, slen, F)
    bsz, slen, feat = enc_cat.shape
    pad = jnp.zeros((bsz, type_e.shape[-1] + id_e.shape[-1]), jnp.float32)
    cls_cat = jnp.concatenate([sentence_cls, pad], axis=-1)      # (bsz, F)

    # ---- binary entity->(cls,mention) incidence, entities 1..E only -------- #
    # (reference sets select_metrix[0][0]=1 but then drops row 0 -> no effect;
    #  normalization by mention count is applied IN-KERNEL in f32 post-matmul.)
    e2m_ent = entity2mention_table[:, 1:, :].astype(jnp.bfloat16)
    E, M1 = e2m_ent.shape[1], e2m_ent.shape[2]
    Ep, M1p = _round_up(max(E, 1), 16), _round_up(M1, 16)        # bf16 sublane pad
    e2m_pad = jnp.zeros((bsz, Ep, M1p), jnp.bfloat16).at[:, :E, :M1].set(e2m_ent)

    # ---- h_t_pairs -> int32 indices (one-hot selection is built in-kernel) -- #
    ht = h_t_pairs + (h_t_pairs == 0).astype(h_t_pairs.dtype) - 1
    P = ht.shape[1]
    tile_p = 256 if P > 256 else _round_up(P, 16)   # 256-row MXU tiles at real scale
    Pp = _round_up(P, tile_p)
    h_idx = jnp.zeros((bsz, Pp, 1), jnp.int32).at[:, :P, 0].set(ht[:, :, 0].astype(jnp.int32))
    t_idx = jnp.zeros((bsz, Pp, 1), jnp.int32).at[:, :P, 0].set(ht[:, :, 1].astype(jnp.int32))

    # ---- weights: bf16 MXU operands (split w1), f32 biases, 128-lane Rp ----- #
    R = params["w2"].shape[-1]
    Rp = _round_up(R, 128)
    w1h = params["w1"][:feat].astype(jnp.bfloat16)               # (F, F)
    w1t = params["w1"][feat:].astype(jnp.bfloat16)               # (F, F)
    b1 = params["b1"].astype(jnp.float32)
    w2p = jnp.zeros((feat, Rp), jnp.bfloat16).at[:, :R].set(params["w2"].astype(jnp.bfloat16))
    b2p = jnp.zeros((1, Rp), jnp.float32).at[:, :R].set(params["b2"])

    logits = fused_rrcs_call(
        mention_id.reshape(bsz, 1, slen).astype(jnp.int32),
        enc_cat.astype(jnp.bfloat16),
        cls_cat.reshape(bsz, 1, feat).astype(jnp.float32),
        e2m_pad, h_idx, t_idx,
        w1h, w1t, b1, w2p, b2p, tile_p)

    return logits[:, :P, :R]


# --------------------------------------------------------------------------- #
# Deterministic synthetic config, parameters and inputs
# --------------------------------------------------------------------------- #
if __name__ == "__main__":
    bsz, slen = 2, 16
    vocab = 64
    bert_hidden, type_size, id_size = 96, 16, 16
    feat = bert_hidden + type_size + id_size          # 128 (plays the role of 808)
    gcn_dim = feat
    relation_num = 16
    entity_type_num = 8
    max_entity_num_cfg = 10
    h_t_limit = 4

    key = jax.random.PRNGKey(0)
    k_words, k_we, k_te, k_ie, k_w1, k_w2 = jax.random.split(key, 6)

    # ---- inputs -----------------------------------------------------------
    words = jax.random.randint(k_words, (bsz, slen), 0, vocab, dtype=jnp.int32)
    mask = jnp.ones((bsz, slen), jnp.float32)

    mention_id_np = np.zeros((bsz, slen), np.int32)
    mention_id_np[0, 2:4] = 1; mention_id_np[0, 5:7] = 2
    mention_id_np[0, 8:10] = 3; mention_id_np[0, 11:13] = 4
    mention_id_np[1, 1:3] = 1; mention_id_np[1, 4:6] = 2; mention_id_np[1, 9:11] = 3
    n_ent = [3, 2]   # local entity counts per batch element

    entity_id_np = np.zeros((bsz, slen), np.int32)
    for i in range(bsz):
        for s in range(slen):
            m = int(mention_id_np[i, s])
            if m > 0:
                entity_id_np[i, s] = ((m - 1) % n_ent[i]) + 1
    entity_type_np = np.where(entity_id_np > 0,
                              (entity_id_np % (entity_type_num - 1)) + 1, 0).astype(np.int32)

    E = int(entity_id_np.max())     # global max entity id (= torch.max(entity_id))
    M = int(mention_id_np.max())    # global max mention num

    # entity2mention_table: padded [bsz, E+1, M+1]; row/col 0 is the "global" node.
    e2m_np = np.zeros((bsz, E + 1, M + 1), np.float32)
    for i in range(bsz):
        e2m_np[i, 0, 0] = 1.0                       # select_metrix[0][0] = 1
        for m in range(1, int(mention_id_np[i].max()) + 1):
            e = ((m - 1) % n_ent[i]) + 1
            e2m_np[i, e, m] = 1.0

    h_t_pairs_np = np.zeros((bsz, h_t_limit, 2), np.int32)
    h_t_pairs_np[0] = [[1, 2], [2, 3], [1, 3], [0, 0]]
    h_t_pairs_np[1] = [[1, 2], [2, 1], [0, 0], [0, 0]]

    # ---- parameters (deterministic init) ----------------------------------
    params = {
        "word_emb": 0.02 * jax.random.normal(k_we, (vocab, bert_hidden), jnp.float32),
        "entity_type_emb": (0.02 * jax.random.normal(
            k_te, (entity_type_num, type_size), jnp.float32)).at[0].set(0.0),   # padding_idx
        "entity_id_emb": (0.02 * jax.random.normal(
            k_ie, (max_entity_num_cfg + 1, id_size), jnp.float32)).at[0].set(0.0),
        "w1": jax.random.normal(k_w1, (2 * gcn_dim, gcn_dim), jnp.float32)
              / np.sqrt(2 * gcn_dim),
        "b1": jnp.zeros((1, gcn_dim), jnp.float32),
        "w2": jax.random.normal(k_w2, (gcn_dim, relation_num), jnp.float32)
              / np.sqrt(gcn_dim),
        "b2": jnp.zeros((1, relation_num), jnp.float32),
    }

    fwd = jax.jit(rrcs_bert_forward)
    out = fwd(params,
              words,
              mask,
              jnp.asarray(entity_type_np),
              jnp.asarray(entity_id_np),
              jnp.asarray(mention_id_np),
              jnp.asarray(e2m_np),
              jnp.asarray(h_t_pairs_np))
    out = jax.block_until_ready(out)
    assert out.shape == (bsz, h_t_limit, relation_num)
    assert bool(jnp.all(jnp.isfinite(out)))
    print("KERNEL_OK")
</pallas_src>

<mosaic_0001>
module attributes {stable_mosaic.version = 11 : i64} {
  func.func @rrcs_fused_kernel(%arg0: i32, %arg1: i32, %arg2: memref<1x1x16xi32, #tpu.memory_space<vmem>>, %arg3: memref<1x16x128xbf16, #tpu.memory_space<vmem>>, %arg4: memref<1x1x128xf32, #tpu.memory_space<vmem>>, %arg5: memref<1x16x16xbf16, #tpu.memory_space<vmem>>, %arg6: memref<1x16x1xi32, #tpu.memory_space<vmem>>, %arg7: memref<1x16x1xi32, #tpu.memory_space<vmem>>, %arg8: memref<128x128xbf16, #tpu.memory_space<vmem>>, %arg9: memref<128x128xbf16, #tpu.memory_space<vmem>>, %arg10: memref<1x128xf32, #tpu.memory_space<vmem>>, %arg11: memref<128x128xbf16, #tpu.memory_space<vmem>>, %arg12: memref<1x128xf32, #tpu.memory_space<vmem>>, %arg13: memref<1x16x128xf32, #tpu.memory_space<vmem>>, %arg14: memref<16x128xbf16, #tpu.memory_space<vmem>>) attributes {dimension_semantics = [#tpu.dimension_semantics<parallel>, #tpu.dimension_semantics<arbitrary>], iteration_bounds = array<i64: 2, 1>, scalar_prefetch = 0 : i64, scratch_operands = 1 : i64, tpu.core_type = #tpu.core_type<tc>, window_params = [{transform_indices = @transform_0, window_bounds = array<i64: 1, 1, 16>}, {transform_indices = @transform_1, window_bounds = array<i64: 1, 16, 128>}, {transform_indices = @transform_2, window_bounds = array<i64: 1, 1, 128>}, {transform_indices = @transform_3, window_bounds = array<i64: 1, 16, 16>}, {transform_indices = @transform_4, window_bounds = array<i64: 1, 16, 1>}, {transform_indices = @transform_5, window_bounds = array<i64: 1, 16, 1>}, {pipeline_mode = #tpu.pipeline_mode<synchronous>, transform_indices = @transform_6, window_bounds = array<i64: 128, 128>}, {pipeline_mode = #tpu.pipeline_mode<synchronous>, transform_indices = @transform_7, window_bounds = array<i64: 128, 128>}, {pipeline_mode = #tpu.pipeline_mode<synchronous>, transform_indices = @transform_8, window_bounds = array<i64: 1, 128>}, {pipeline_mode = #tpu.pipeline_mode<synchronous>, transform_indices = @transform_9, window_bounds = array<i64: 128, 128>}, {pipeline_mode = #tpu.pipeline_mode<synchronous>, transform_indices = @transform_10, window_bounds = array<i64: 1, 128>}, {transform_indices = @transform_11, window_bounds = array<i64: 1, 16, 128>}]} {
    %c0_i32 = arith.constant 0 : i32
    %0 = arith.cmpi eq, %arg1, %c0_i32 : i32
    %1 = arith.extui %0 : i1 to i32
    %c0_i32_0 = arith.constant 0 : i32
    %2 = arith.cmpi ne, %1, %c0_i32_0 : i32
    scf.if %2 {
      %c0_25 = arith.constant 0 : index
      %c0_26 = arith.constant 0 : index
      %c0_27 = arith.constant 0 : index
      %44 = vector.load %arg3[%c0_25, %c0_26, %c0_27] : memref<1x16x128xbf16, #tpu.memory_space<vmem>>, vector<1x16x128xbf16>
      %45 = vector.shape_cast %44 : vector<1x16x128xbf16> to vector<16x128xbf16>
      %c0_28 = arith.constant 0 : index
      %c0_29 = arith.constant 0 : index
      %c0_30 = arith.constant 0 : index
      %46 = vector.load %arg2[%c0_28, %c0_29, %c0_30] : memref<1x1x16xi32, #tpu.memory_space<vmem>>, vector<1x1x16xi32>
      %47 = vector.shape_cast %46 : vector<1x1x16xi32> to vector<1x16xi32>
      %c0_31 = arith.constant 0 : index
      %c0_32 = arith.constant 0 : index
      %c0_33 = arith.constant 0 : index
      %48 = vector.load %arg4[%c0_31, %c0_32, %c0_33] : memref<1x1x128xf32, #tpu.memory_space<vmem>>, vector<1x1x128xf32>
      %49 = vector.shape_cast %48 : vector<1x1x128xf32> to vector<1x128xf32>
      %50 = tpu.iota {dimensions = array<i32: 0>} : vector<16x16xi32>
      %51 = vector.shape_cast %47 : vector<1x16xi32> to vector<1x16xi32>
      %52 = vector.broadcast %51 : vector<1x16xi32> to vector<16x16xi32>
      %53 = arith.cmpi eq, %50, %52 : vector<16x16xi32>
      %c1_i32 = arith.constant 1 : i32
      %54 = vector.broadcast %c1_i32 : i32 to vector<16x16xi32>
      %55 = arith.cmpi sge, %50, %54 : vector<16x16xi32>
      %56 = arith.andi %53, %55 : vector<16x16xi1>
      %57 = arith.extui %56 : vector<16x16xi1> to vector<16x16xi32>
      %58 = arith.sitofp %57 : vector<16x16xi32> to vector<16x16xf32>
      %59 = arith.truncf %58 : vector<16x16xf32> to vector<16x16xbf16>
      %60 = arith.extui %56 : vector<16x16xi1> to vector<16x16xi32>
      %61 = arith.sitofp %60 : vector<16x16xi32> to vector<16x16xf32>
      %cst_34 = arith.constant dense<0.000000e+00> : vector<16xf32>
      %62 = vector.multi_reduction <add>, %61, %cst_34 [1] : vector<16x16xf32> to vector<16xf32>
      %63 = vector.shape_cast %62 : vector<16xf32> to vector<16x1xf32>
      %cst_35 = arith.constant 0.000000e+00 : f32
      %64 = vector.broadcast %cst_35 : f32 to vector<16x1xf32>
      %65 = arith.cmpf ogt, %63, %64 : vector<16x1xf32>
      %cst_36 = arith.constant 1.000000e+00 : f32
      %66 = vector.broadcast %cst_36 : f32 to vector<16x1xf32>
      %67 = arith.select %65, %63, %66 : vector<16x1xi1>, vector<16x1xf32>
      %68 = tpu.reciprocal %67 {approx = true} : vector<16x1xf32> -> vector<16x1xf32>
      %cst_37 = arith.constant dense<0.000000e+00> : vector<16x128xf32>
      %69 = tpu.matmul %59, %45, %cst_37 {dimension_numbers = #tpu.dot_dimension_numbers<[1], [0], [0], [1], [0, 0, 1, 1], [], []>} : vector<16x16xbf16>, vector<16x128xbf16>, vector<16x128xf32> -> vector<16x128xf32>
      %70 = vector.broadcast %68 : vector<16x1xf32> to vector<16x128xf32>
      %71 = arith.mulf %69, %70 : vector<16x128xf32>
      %72 = tpu.iota {dimensions = array<i32: 0>} : vector<16x1xi32>
      %c0_i32_38 = arith.constant 0 : i32
      %73 = vector.broadcast %c0_i32_38 : i32 to vector<16x1xi32>
      %74 = arith.cmpi eq, %72, %73 : vector<16x1xi32>
      %75 = arith.extui %74 : vector<16x1xi1> to vector<16x1xi32>
      %76 = arith.sitofp %75 : vector<16x1xi32> to vector<16x1xf32>
      %77 = vector.broadcast %76 : vector<16x1xf32> to vector<16x128xf32>
      %78 = vector.broadcast %49 : vector<1x128xf32> to vector<16x128xf32>
      %79 = arith.mulf %77, %78 : vector<16x128xf32>
      %80 = arith.addf %71, %79 : vector<16x128xf32>
      %c0_39 = arith.constant 0 : index
      %c0_40 = arith.constant 0 : index
      %c0_41 = arith.constant 0 : index
      %81 = vector.load %arg5[%c0_39, %c0_40, %c0_41] : memref<1x16x16xbf16, #tpu.memory_space<vmem>>, vector<1x16x16xbf16>
      %82 = vector.shape_cast %81 : vector<1x16x16xbf16> to vector<16x16xbf16>
      %83 = arith.extf %82 : vector<16x16xbf16> to vector<16x16xf32>
      %cst_42 = arith.constant dense<0.000000e+00> : vector<16xf32>
      %84 = vector.multi_reduction <add>, %83, %cst_42 [1] : vector<16x16xf32> to vector<16xf32>
      %85 = vector.shape_cast %84 : vector<16xf32> to vector<16x1xf32>
      %cst_43 = arith.constant 0.000000e+00 : f32
      %86 = vector.broadcast %cst_43 : f32 to vector<16x1xf32>
      %87 = arith.cmpf ogt, %85, %86 : vector<16x1xf32>
      %cst_44 = arith.constant 1.000000e+00 : f32
      %88 = vector.broadcast %cst_44 : f32 to vector<16x1xf32>
      %89 = arith.select %87, %85, %88 : vector<16x1xi1>, vector<16x1xf32>
      %90 = tpu.reciprocal %89 {approx = true} : vector<16x1xf32> -> vector<16x1xf32>
      %91 = arith.truncf %80 : vector<16x128xf32> to vector<16x128xbf16>
      %cst_45 = arith.constant dense<0.000000e+00> : vector<16x128xf32>
      %92 = tpu.matmul %82, %91, %cst_45 {dimension_numbers = #tpu.dot_dimension_numbers<[1], [0], [0], [1], [0, 0, 1, 1], [], []>} : vector<16x16xbf16>, vector<16x128xbf16>, vector<16x128xf32> -> vector<16x128xf32>
      %93 = vector.broadcast %90 : vector<16x1xf32> to vector<16x128xf32>
      %94 = arith.mulf %92, %93 : vector<16x128xf32>
      %95 = arith.truncf %94 : vector<16x128xf32> to vector<16x128xbf16>
      %c0_46 = arith.constant 0 : index
      %c0_47 = arith.constant 0 : index
      %96 = vector.load %arg14[%c0_46, %c0_47] : memref<16x128xbf16, #tpu.memory_space<vmem>>, vector<16x128xbf16>
      tpu.vector_store %arg14[%c0_46, %c0_47], %95 {strides = array<i32>} : memref<16x128xbf16, #tpu.memory_space<vmem>>, vector<16x128xbf16>,
    } else {
    }
    %c0 = arith.constant 0 : index
    %c0_1 = arith.constant 0 : index
    %c0_2 = arith.constant 0 : index
    %3 = vector.load %arg6[%c0, %c0_1, %c0_2] : memref<1x16x1xi32, #tpu.memory_space<vmem>>, vector<1x16x1xi32>
    %4 = vector.shape_cast %3 : vector<1x16x1xi32> to vector<16x1xi32>
    %c0_3 = arith.constant 0 : index
    %c0_4 = arith.constant 0 : index
    %c0_5 = arith.constant 0 : index
    %5 = vector.load %arg7[%c0_3, %c0_4, %c0_5] : memref<1x16x1xi32, #tpu.memory_space<vmem>>, vector<1x16x1xi32>
    %6 = vector.shape_cast %5 : vector<1x16x1xi32> to vector<16x1xi32>
    %7 = tpu.iota {dimensions = array<i32: 1>} : vector<16x16xi32>
    %8 = vector.broadcast %4 : vector<16x1xi32> to vector<16x16xi32>
    %9 = arith.cmpi eq, %7, %8 : vector<16x16xi32>
    %10 = arith.extui %9 : vector<16x16xi1> to vector<16x16xi32>
    %11 = arith.sitofp %10 : vector<16x16xi32> to vector<16x16xf32>
    %12 = arith.truncf %11 : vector<16x16xf32> to vector<16x16xbf16>
    %13 = vector.broadcast %6 : vector<16x1xi32> to vector<16x16xi32>
    %14 = arith.cmpi eq, %7, %13 : vector<16x16xi32>
    %15 = arith.extui %14 : vector<16x16xi1> to vector<16x16xi32>
    %16 = arith.sitofp %15 : vector<16x16xi32> to vector<16x16xf32>
    %17 = arith.truncf %16 : vector<16x16xf32> to vector<16x16xbf16>
    %18 = tpu.concatenate %12, %17 in 0 : vector<16x16xbf16>, vector<16x16xbf16> -> vector<32x16xbf16>
    %c0_6 = arith.constant 0 : index
    %c0_7 = arith.constant 0 : index
    %19 = vector.load %arg14[%c0_6, %c0_7] : memref<16x128xbf16, #tpu.memory_space<vmem>>, vector<16x128xbf16>
    %cst = arith.constant dense<0.000000e+00> : vector<32x128xf32>
    %20 = tpu.matmul %18, %19, %cst {dimension_numbers = #tpu.dot_dimension_numbers<[1], [0], [0], [1], [0, 0, 1, 1], [], []>} : vector<32x16xbf16>, vector<16x128xbf16>, vector<32x128xf32> -> vector<32x128xf32>
    %21 = vector.extract_strided_slice %20 {offsets = [0, 0], sizes = [16, 128], strides = [1, 1]} : vector<32x128xf32> to vector<16x128xf32>
    %22 = arith.truncf %21 : vector<16x128xf32> to vector<16x128xbf16>
    %23 = vector.extract_strided_slice %20 {offsets = [16, 0], sizes = [16, 128], strides = [1, 1]} : vector<32x128xf32> to vector<16x128xf32>
    %24 = arith.truncf %23 : vector<16x128xf32> to vector<16x128xbf16>
    %c0_8 = arith.constant 0 : index
    %c0_9 = arith.constant 0 : index
    %25 = vector.load %arg8[%c0_8, %c0_9] : memref<128x128xbf16, #tpu.memory_space<vmem>>, vector<128x128xbf16>
    %cst_10 = arith.constant dense<0.000000e+00> : vector<16x128xf32>
    %26 = tpu.matmul %22, %25, %cst_10 {dimension_numbers = #tpu.dot_dimension_numbers<[1], [0], [0], [1], [0, 0, 1, 1], [], []>} : vector<16x128xbf16>, vector<128x128xbf16>, vector<16x128xf32> -> vector<16x128xf32>
    %c0_11 = arith.constant 0 : index
    %c0_12 = arith.constant 0 : index
    %27 = vector.load %arg9[%c0_11, %c0_12] : memref<128x128xbf16, #tpu.memory_space<vmem>>, vector<128x128xbf16>
    %cst_13 = arith.constant dense<0.000000e+00> : vector<16x128xf32>
    %28 = tpu.matmul %24, %27, %cst_13 {dimension_numbers = #tpu.dot_dimension_numbers<[1], [0], [0], [1], [0, 0, 1, 1], [], []>} : vector<16x128xbf16>, vector<128x128xbf16>, vector<16x128xf32> -> vector<16x128xf32>
    %29 = arith.addf %26, %28 : vector<16x128xf32>
    %c0_14 = arith.constant 0 : index
    %c0_15 = arith.constant 0 : index
    %30 = vector.load %arg10[%c0_14, %c0_15] : memref<1x128xf32, #tpu.memory_space<vmem>>, vector<1x128xf32>
    %31 = vector.broadcast %30 : vector<1x128xf32> to vector<16x128xf32>
    %32 = arith.addf %29, %31 : vector<16x128xf32>
    %cst_16 = arith.constant 0.000000e+00 : f32
    %33 = vector.broadcast %cst_16 : f32 to vector<16x128xf32>
    %34 = arith.maximumf %32, %33 : vector<16x128xf32>
    %35 = arith.truncf %34 : vector<16x128xf32> to vector<16x128xbf16>
    %c0_17 = arith.constant 0 : index
    %c0_18 = arith.constant 0 : index
    %36 = vector.load %arg11[%c0_17, %c0_18] : memref<128x128xbf16, #tpu.memory_space<vmem>>, vector<128x128xbf16>
    %cst_19 = arith.constant dense<0.000000e+00> : vector<16x128xf32>
    %37 = tpu.matmul %35, %36, %cst_19 {dimension_numbers = #tpu.dot_dimension_numbers<[1], [0], [0], [1], [0, 0, 1, 1], [], []>} : vector<16x128xbf16>, vector<128x128xbf16>, vector<16x128xf32> -> vector<16x128xf32>
    %c0_20 = arith.constant 0 : index
    %c0_21 = arith.constant 0 : index
    %38 = vector.load %arg12[%c0_20, %c0_21] : memref<1x128xf32, #tpu.memory_space<vmem>>, vector<1x128xf32>
    %39 = vector.broadcast %38 : vector<1x128xf32> to vector<16x128xf32>
    %40 = arith.addf %37, %39 : vector<16x128xf32>
    %c0_22 = arith.constant 0 : index
    %c0_23 = arith.constant 0 : index
    %c0_24 = arith.constant 0 : index
    %41 = vector.load %arg13[%c0_22, %c0_23, %c0_24] : memref<1x16x128xf32, #tpu.memory_space<vmem>>, vector<1x16x128xf32>
    %42 = vector.shape_cast %41 : vector<1x16x128xf32> to vector<16x128xf32>
    %43 = vector.shape_cast %40 : vector<16x128xf32> to vector<1x16x128xf32>
    tpu.vector_store %arg13[%c0_22, %c0_23, %c0_24], %43 {strides = array<i32>} : memref<1x16x128xf32, #tpu.memory_space<vmem>>, vector<1x16x128xf32>,
    return
  }
  func.func @transform_0(%arg0: i32, %arg1: i32) -> (i32, i32, i32) {
    %c0_i32 = arith.constant 0 : i32
    %c0_i32_0 = arith.constant 0 : i32
    %c0_i32_1 = arith.constant 0 : i32
    return %arg0, %c0_i32, %c0_i32_0 : i32, i32, i32
  }
  func.func @transform_1(%arg0: i32, %arg1: i32) -> (i32, i32, i32) {
    %c0_i32 = arith.constant 0 : i32
    %c0_i32_0 = arith.constant 0 : i32
    %c0_i32_1 = arith.constant 0 : i32
    return %arg0, %c0_i32, %c0_i32_0 : i32, i32, i32
  }
  func.func @transform_2(%arg0: i32, %arg1: i32) -> (i32, i32, i32) {
    %c0_i32 = arith.constant 0 : i32
    %c0_i32_0 = arith.constant 0 : i32
    %c0_i32_1 = arith.constant 0 : i32
    return %arg0, %c0_i32, %c0_i32_0 : i32, i32, i32
  }
  func.func @transform_3(%arg0: i32, %arg1: i32) -> (i32, i32, i32) {
    %c0_i32 = arith.constant 0 : i32
    %c0_i32_0 = arith.constant 0 : i32
    %c0_i32_1 = arith.constant 0 : i32
    return %arg0, %c0_i32, %c0_i32_0 : i32, i32, i32
  }
  func.func @transform_4(%arg0: i32, %arg1: i32) -> (i32, i32, i32) {
    %c0_i32 = arith.constant 0 : i32
    %c0_i32_0 = arith.constant 0 : i32
    return %arg0, %arg1, %c0_i32 : i32, i32, i32
  }
  func.func @transform_5(%arg0: i32, %arg1: i32) -> (i32, i32, i32) {
    %c0_i32 = arith.constant 0 : i32
    %c0_i32_0 = arith.constant 0 : i32
    return %arg0, %arg1, %c0_i32 : i32, i32, i32
  }
  func.func @transform_6(%arg0: i32, %arg1: i32) -> (i32, i32) {
    %c0_i32 = arith.constant 0 : i32
    %c0_i32_0 = arith.constant 0 : i32
    %c0_i32_1 = arith.constant 0 : i32
    return %c0_i32, %c0_i32_0 : i32, i32
  }
  func.func @transform_7(%arg0: i32, %arg1: i32) -> (i32, i32) {
    %c0_i32 = arith.constant 0 : i32
    %c0_i32_0 = arith.constant 0 : i32
    %c0_i32_1 = arith.constant 0 : i32
    return %c0_i32, %c0_i32_0 : i32, i32
  }
  func.func @transform_8(%arg0: i32, %arg1: i32) -> (i32, i32) {
    %c0_i32 = arith.constant 0 : i32
    %c0_i32_0 = arith.constant 0 : i32
    %c0_i32_1 = arith.constant 0 : i32
    return %c0_i32, %c0_i32_0 : i32, i32
  }
  func.func @transform_9(%arg0: i32, %arg1: i32) -> (i32, i32) {
    %c0_i32 = arith.constant 0 : i32
    %c0_i32_0 = arith.constant 0 : i32
    %c0_i32_1 = arith.constant 0 : i32
    return %c0_i32, %c0_i32_0 : i32, i32
  }
  func.func @transform_10(%arg0: i32, %arg1: i32) -> (i32, i32) {
    %c0_i32 = arith.constant 0 : i32
    %c0_i32_0 = arith.constant 0 : i32
    %c0_i32_1 = arith.constant 0 : i32
    return %c0_i32, %c0_i32_0 : i32, i32
  }
  func.func @transform_11(%arg0: i32, %arg1: i32) -> (i32, i32, i32) {
    %c0_i32 = arith.constant 0 : i32
    %c0_i32_0 = arith.constant 0 : i32
    return %arg0, %arg1, %c0_i32 : i32, i32, i32
  }
}

</mosaic_0001>

<bundles_post_ra>
// kernel: rrcs_bert_forward.1
= control target key start
LH: loop header
LB: loop body
LE: loop exit
PB: predicated region body
PF: predicated region fallthrough
CT: control target
= control target key end

     0   :  { %s3029_s0 = inlined_call_operand.hbm [shape: s32[2,1,16], index: 0, kind: input, shape index: {}]   ;;  %s3030_s1 = inlined_call_operand.hbm [shape: bf16[2,16,128], index: 1, kind: input, shape index: {}]   ;;  %s3031_s2 = inlined_call_operand.hbm [shape: f32[2,1,128], index: 2, kind: input, shape index: {}]   ;;  %s3032_s3 = inlined_call_operand.hbm [shape: bf16[2,16,16], index: 3, kind: input, shape index: {}]   ;;  %s3033_s4 = inlined_call_operand.hbm [shape: s32[2,16,1], index: 4, kind: input, shape index: {}]   ;;  %s3034_s5 = inlined_call_operand.hbm [shape: s32[2,16,1], index: 5, kind: input, shape index: {}]   ;;  %s3035_s6 = inlined_call_operand.hbm [shape: bf16[128,128], index: 6, kind: input, shape index: {}]   ;;  %s3036_s7 = inlined_call_operand.hbm [shape: bf16[128,128], index: 7, kind: input, shape index: {}]   ;;  %s3037_s8 = inlined_call_operand.hbm [shape: f32[1,128], index: 8, kind: input, shape index: {}]   ;;  %s3038_s9 = inlined_call_operand.hbm [shape: bf16[128,128], index: 9, kind: input, shape index: {}]   ;;  %s3039_s10 = inlined_call_operand.hbm [shape: f32[1,128], index: 10, kind: input, shape index: {}]   ;;  %s3040_s11 = inlined_call_operand.hbm [shape: f32[2,16,128], index: 11, kind: output, shape index: {}]  }
   0x1   :  { %3070 = sst [smem:[#allocation39_spill]] %s3030_s1 }
   0x2   :  { %3071 = sst [smem:[#allocation40_spill]] %s3032_s3 }
   0x3   :  { %3072 = sst [smem:[#allocation41_spill]] %s3034_s5 }
   0x4   :  { %3073 = sst [smem:[#allocation42_spill]] %s3035_s6 }
   0x5   :  { %3074 = sst [smem:[#allocation43_spill]] %s3036_s7 }
   0x6   :  { %3075 = sst [smem:[#allocation44_spill]] %s3038_s9 }
   0x7   :  { %3076 = sst [smem:[#allocation45_spill]] %s3040_s11 }
   0x8   :  { %16 = vsyncpa [#allocation4], 0 }
   0x9   :  { %18 = vsyncpa [#allocation4 + $0x1], 0 }
   0xa   :  { %19 = vsyncpa [#allocation7], 0 }
   0xb   :  { %21 = vsyncpa [#allocation7 + $0x1], 0 }
   0xc   :  { %22 = vsyncpa [#allocation10], 0 }
   0xd   :  { %24 = vsyncpa [#allocation10 + $0x1], 0 }
   0xe   :  { %25 = vsyncpa [#allocation13], 0 }
   0xf   :  { %27 = vsyncpa [#allocation13 + $0x1], 0 }
  0x10   :  { %28 = vsyncpa [#allocation16], 0 }
  0x11   :  { %29 = vsyncpa [#allocation19], 0 }
  0x12   :  { %30 = vsyncpa [#allocation5], 0 }
  0x13   :  { %32 = vsyncpa [#allocation5 + $0x1], 0  ;;  %s2431_s17 = smov 0   ;;  %s2433_s18 = smov 0  }
  0x14   :  { %s2435_s19 = smov 0   ;;  %s2437_s20 = smov 0  }
  0x15   :  { %s2439_s21 = smov 0   ;;  %s2441_s22 = smov 0  }
  0x16 LB: > { %3077 = sst [smem:[#allocation30_spill]] %s2328_s17  ;;  %s2462_s23 = sadd.s32 4294967295, %s2348_s22   ;;  %s2348_s22 = sphi %s2441_s22, %s38_s22   ;;  %s2344_s21 = sphi %s2439_s21, %s3137_s21   ;;  %s2340_s20 = sphi %s2437_s20, %s3136_s20   ;;  %s2336_s19 = sphi %s2435_s19, %s3132_s19   ;;  %s2332_s18 = sphi %s2433_s18, %s3135_s18   ;;  %s2328_s17 = sphi %s2431_s17, %s3134_s17  }
  0x17   : > { %3078 = sst [smem:[#allocation31_spill]] %s2336_s19  ;;  %s1542_s24 = sadd.s32 4294967294, %s2348_s22  }
  0x18   : > { %3079 = sst [smem:[#allocation32_spill]] %s2340_s20  ;;  %p70_p0 = scmp.ne.s32.totalorder %s2332_s18, %s2328_s17 }
  0x19   : > { %3080 = sst [smem:[#allocation33_spill]] %s2348_s22  ;;  %p3044_p1 = scmp.eq.s32.totalorder %s2462_s23, 0 }
  0x1a   : > { %p341_p3 = scmp.eq.s32.totalorder %s1542_s24, 1  ;;  %p1543_p5 = scmp.ge.s32.totalorder %s2348_s22, 1 }
  0x1b   : > { %p2471_p4 = por %p3044_p1, %p70_p0  ;;  %p348_p7 = scmp.lt.s32.totalorder %s2348_s22, 3 }
  0x1c   : > { %p2476_p6 = por %p341_p3, %p70_p0  ;;  %s2350_s28 = smov [#allocation14]  }
  0x1d   : > { %s3081_s25 = scalar_select %p2471_p4, 1, 0 }
  0x1e   : > { %s3083_s26 = scalar_select %p2476_p6, 1, 0 }
  0x1f   : > { %3082 = sst [smem:[#allocation34_spill]] %s3081_s25  ;;  %p2481_p8 = pnand %p1543_p5, %p348_p7 }
  0x20   : > { %3084 = sst [smem:[#allocation35_spill]] %s3083_s26  ;;  %s360_s29 = sshll.u32 %s2350_s28, 4  ;;  %s2485_s29 = int_to_ptr.vmem [resolvable:$true] %s360_s29 }
  0x21   : > { %s3085_s27 = scalar_select %p2481_p8, 1, 0 }
  0x22   : > { %p1772_p9 = pneg %p2481_p8  ;;  %s2351_s12 = smov [#allocation15]  }
  0x23   : > { %3086 = sst [smem:[#allocation36_spill]] %s3085_s27  ;;  %s373_s13 = sshll.u32 %s2351_s12, 4  ;;  %s2496_s13 = int_to_ptr.vmem [resolvable:$true] %s373_s13 }
  0x24   : > { %p2492_p11 = pnand %p1772_p9, %p3044_p1  ;;  %s2352_s14 = smov [#allocation18]  }
  0x25   : > { %s2498_s15 = sshll.u32 %s2352_s14, 4  ;;  %s3088_s6 = sld [smem:[#allocation42_spill]]  ;;  %s398_s15 = int_to_ptr.vmem [resolvable:$true] %s2498_s15 }
  0x26   : > { %s3087_s30 = scalar_select %p2492_p11, 1, 0 }
  0x27   : > { %p2508_p13 = pneg %p2492_p11 }
  0x29   : > { %s3089_s11 = scalar_select %p2508_p13, 1, 0 }
  0x2b   : > { %s1922_s28 = scalar_lea.hbm %s3088_s6, 1024 }
  0x2c   : > { %p1923_p12 = scmp.ne.s32.totalorder %s3088_s6, %s1922_s28  ;;  %p1929_p5 = scmp.lt.u32.totalorder %s1922_s28, %s3088_s6 }
  0x2e   : > { %p1925_p0 = pnand %p2508_p13, %p1923_p12 }
  0x30   : > { %p1926_p3 = pneg %p1925_p0 }
  0x32   : > { %p1931_p7 = pnand %p1929_p5, %p1926_p3 }
  0x34   : > { %1934 = shalt.err (!%p1931_p7)
}
  0x35   : > { %s1935_s17 = scalar_lea.vmem %s2485_s29, 1024  ;;  %p1943_p2 = scmp.lt.s32.totalorder %s2485_s29, %s2485_s29 }
  0x36   : > { %p1936_p9 = scmp.ne.s32.totalorder %s2485_s29, %s1935_s17  ;;  %p1944_p6 = scmp.lt.s32.totalorder %s1935_s17, %s1935_s17 }
  0x38   : > { %p1938_p10 = pnand %p1936_p9, %p2508_p13  ;;  %p1945_p12 = por %p1944_p6, %p1943_p2 }
  0x3a   : > { %p1939_p1 = pneg %p1938_p10 }
  0x3c   : > { %p1946_p0 = pnand %p1945_p12, %p1939_p1 }
  0x3e   : > { %1949 = shalt.err (!%p1946_p0)
}
  0x3f   : > { %s3051_s26 = smov 64   ;;  %s3053_s16 = smov 4  }
  0x40   : > { %1775 = dma.hbm_to_vmem [thread:$0]  (!%p2492_p11), %s3088_s6, 1024, %s2485_s29, [#allocation13], %s3051_s26, %s3051_s26, %s3053_s16  }
  0x41   : > { %s3090_s7 = sld [smem:[#allocation43_spill]] }
  0x47   : > { %s1950_s17 = scalar_lea.hbm %s3090_s7, 1024 }
  0x48   : > { %p1951_p1 = scmp.ne.s32.totalorder %s3090_s7, %s1950_s17  ;;  %p1957_p10 = scmp.lt.u32.totalorder %s1950_s17, %s3090_s7 }
  0x4a   : > { %p1953_p2 = pnand %p1951_p1, %p2508_p13 }
  0x4c   : > { %p1954_p6 = pneg %p1953_p2 }
  0x4e   : > { %p1959_p3 = pnand %p1957_p10, %p1954_p6 }
  0x50   : > { %1962 = shalt.err (!%p1959_p3)
}
  0x51   : > { %s1963_s29 = scalar_lea.vmem %s2496_s13, 1024  ;;  %p1971_p12 = scmp.lt.s32.totalorder %s2496_s13, %s2496_s13 }
  0x52   : > { %p1964_p5 = scmp.ne.s32.totalorder %s2496_s13, %s1963_s29  ;;  %p1972_p0 = scmp.lt.s32.totalorder %s1963_s29, %s1963_s29 }
  0x54   : > { %p1966_p7 = pnand %p1964_p5, %p2508_p13  ;;  %p1973_p1 = por %p1972_p0, %p1971_p12 }
  0x56   : > { %p1967_p9 = pneg %p1966_p7 }
  0x58   : > { %p1974_p2 = pnand %p1973_p1, %p1967_p9 }
  0x5a   : > { %1977 = shalt.err (!%p1974_p2)
}
  0x5b   : > { %1778 = dma.hbm_to_vmem [thread:$0]  (!%p2492_p11), %s3090_s7, 1024, %s2496_s13, [#allocation16], %s3051_s26, %s3051_s26, %s3053_s16  }
  0x5c   : > { %s3091_s9 = sld [smem:[#allocation44_spill]] }
  0x62   : > { %s1978_s24 = scalar_lea.hbm %s3091_s9, 1024 }
  0x63   : > { %p1979_p6 = scmp.ne.s32.totalorder %s3091_s9, %s1978_s24  ;;  %p1985_p5 = scmp.lt.u32.totalorder %s1978_s24, %s3091_s9 }
  0x65   : > { %p1981_p10 = pnand %p1979_p6, %p2508_p13 }
  0x67   : > { %p1982_p3 = pneg %p1981_p10 }
  0x69   : > { %p1987_p7 = pnand %p1985_p5, %p1982_p3 }
  0x6b   : > { %1990 = shalt.err (!%p1987_p7)
}
  0x6c   : > { %s1991_s29 = scalar_lea.vmem %s398_s15, 1024  ;;  %p1999_p1 = scmp.lt.s32.totalorder %s398_s15, %s398_s15 }
  0x6d   : > { %p1992_p9 = scmp.ne.s32.totalorder %s398_s15, %s1991_s29  ;;  %p2000_p2 = scmp.lt.s32.totalorder %s1991_s29, %s1991_s29 }
  0x6f   : > { %p1994_p12 = pnand %p1992_p9, %p2508_p13  ;;  %p2001_p4 = por %p2000_p2, %p1999_p1 }
  0x71   : > { %p1995_p0 = pneg %p1994_p12 }
  0x73   : > { %p2002_p8 = pnand %p2001_p4, %p1995_p0 }
  0x75   : > { %2005 = shalt.err (!%p2002_p8)
}
  0x76   : > { %1784 = dma.hbm_to_vmem [thread:$0]  (!%p2492_p11), %s3091_s9, 1024, %s398_s15, [#allocation19], %s3051_s26, %s3051_s26, %s3053_s16  }
  0x77   : > { %s57_s20 = sadd.s32 1, %s2336_s19  ;;  %s50_s25 = sadd.s32 1, %s2344_s21 }
  0x78   : > { %p64_p4 = scmp.ne.s32.totalorder %s2336_s19, %s2332_s18  ;;  %p52_p8 = scmp.ge.s32.totalorder %s50_s25, 2 }
  0x79   : > { %p65_p6 = scmp.eq.s32.totalorder %s2348_s22, 0  ;;  %p3092_p10 = scmp.eq.s32.totalorder %s2462_s23, 1 }
  0x7a   : > { %p1816_p5 = scmp.lt.s32.totalorder %s2348_s22, 2  ;;  %s3139_s25 = smov (%p52_p8, %s50_s25), 0 }
  0x7b   : > { %p2587_p3 = por %p3092_p10, %p64_p4  ;;  %3094 = sst [smem:[#allocation37_spill]] %s3139_s25 }
  0x7c   : > { %p66_p7 = por %p65_p6, %p64_p4  ;;  %s2595_s24 = sand.u32 1, %s2336_s19  }
  0x7d   : > { %s3093_s27 = scalar_select %p2587_p3, 1, 0 }
  0x7e   : > { %s54_s15 = ssub.s32 %s2344_s21, %s3139_s25  ;;  %s2600_s28 = sand.u32 1, %s2348_s22  }
  0x7f   : > { %p55_p9 = scmp.eq.s32.totalorder %s54_s15, 0  ;;  %p2602_p12 = pnand %p1816_p5, %p66_p7 }
  0x80   : > { %s3055_s14 = sshll.u32 %s2595_s24, 3  ;;  %s3056_s29 = sshll.u32 %s2344_s21, 7 }
  0x81   : > { %s3095_s12 = scalar_select %p2602_p12, 1, 0 }
  0x82   : > { %s2608_s17 = scalar_select %p55_p9, %s2336_s19, %s57_s20  }
  0x83   : > { %s443_s13 = scalar_lea.vmem [#allocation6], %s3055_s14  ;;  %s3097_s1 = sld [smem:[#allocation39_spill]] }
  0x84   : > { %3096 = sst [smem:[#allocation38_spill]] %s2608_s17  ;;  %s450_s5 = sshll.u32 %s443_s13, 4  ;;  %s2620_s5 = int_to_ptr.vmem [resolvable:$true] %s450_s5 }
  0x85   : > { %p2627_p1 = pneg %p2602_p12 }
  0x87   : > { %s3098_s20 = scalar_select %p2627_p1, 1, 0 }
  0x89   : > { %s2618_s6 = scalar_lea.hbm %s3097_s1, %s3056_s29  ;;  %s2011_s13 = scalar_lea.hbm %s3097_s1, 256 }
  0x8a   : > { %s2006_s7 = scalar_lea.hbm %s2618_s6, 128  ;;  %p2012_p8 = scmp.lt.u32.totalorder %s2618_s6, %s3097_s1 }
  0x8b   : > { %p2007_p0 = scmp.ne.s32.totalorder %s2618_s6, %s2006_s7  ;;  %p2013_p6 = scmp.lt.u32.totalorder %s2011_s13, %s2006_s7 }
  0x8c   : > { %p2015_p5 = scmp.lt.u32.totalorder %s2006_s7, %s2618_s6 }
  0x8d   : > { %p2009_p2 = pnand %p2627_p1, %p2007_p0  ;;  %p2014_p10 = por %p2013_p6, %p2012_p8 }
  0x8f   : > { %p2010_p4 = pneg %p2009_p2  ;;  %p2016_p7 = por %p2015_p5, %p2014_p10 }
  0x91   : > { %p2017_p9 = pnand %p2016_p7, %p2010_p4 }
  0x93   : > { %2020 = shalt.err (!%p2017_p9)
}
  0x94   : > { %s2021_s15 = scalar_lea.vmem %s2620_s5, 128  ;;  %s2355_s26 = smov [#allocation6]  }
  0x95   : > { %p2022_p0 = scmp.ne.s32.totalorder %s2620_s5, %s2021_s15  ;;  %s2026_s16 = sshll.u32 %s2355_s26, 4  ;;  %s2027_s16 = int_to_ptr.vmem [resolvable:$false] %s2026_s16 }
  0x96   : > { %s2028_s14 = scalar_lea.vmem %s2027_s16, 256  ;;  %p2029_p11 = scmp.lt.s32.totalorder %s2620_s5, %s2027_s16 }
  0x97   : > { %p2024_p2 = pnand %p2022_p0, %p2627_p1  ;;  %p2030_p13 = scmp.lt.s32.totalorder %s2028_s14, %s2021_s15 }
  0x99   : > { %p2025_p3 = pneg %p2024_p2  ;;  %p2031_p8 = por %p2030_p13, %p2029_p11 }
  0x9b   : > { %p2032_p6 = pnand %p2031_p8, %p2025_p3 }
  0x9d   : > { %2035 = shalt.err (!%p2032_p6)
}
  0x9e   : > { %s3099_s7 = smov 4   ;;  %s3100_s29 = smov 64  }
  0x9f   : > { %s3101_s13 = scalar_lea.sflag [#allocation7], %s2600_s28  ;;  %s3102_s26 = sshll.u32 %s2344_s21, 7 }
  0xa0   : > { %1794 = dma.hbm_to_vmem [thread:$0]  (!%p2602_p12), %s2618_s6, 128, %s2620_s5, %s3101_s13, %s3100_s29, %s3100_s29, %s3099_s7  }
  0xa1   : > { %s3103_s3 = sld [smem:[#allocation40_spill]]  ;;  %s3104_s1 = sshll.u32 %s2595_s24, 3 }
  0xa2   : > { %s481_s9 = scalar_lea.vmem [#allocation9], %s3104_s1  ;;  %s478_s17 = scalar_lea.sflag [#allocation10], %s2600_s28 }
  0xa3   : > { %s488_s25 = sshll.u32 %s481_s9, 4  ;;  %s2664_s25 = int_to_ptr.vmem [resolvable:$true] %s488_s25 }
  0xa7   : > { %s2660_s14 = scalar_lea.hbm %s3103_s3, %s3102_s26  ;;  %s2041_s13 = scalar_lea.hbm %s3103_s3, 256 }
  0xa8   : > { %s2036_s19 = scalar_lea.hbm %s2660_s14, 128  ;;  %p2042_p4 = scmp.lt.u32.totalorder %s2660_s14, %s3103_s3 }
  0xa9   : > { %p2037_p11 = scmp.ne.s32.totalorder %s2660_s14, %s2036_s19  ;;  %p2043_p10 = scmp.lt.u32.totalorder %s2041_s13, %s2036_s19 }
  0xaa   : > { %p2045_p7 = scmp.lt.u32.totalorder %s2036_s19, %s2660_s14 }
  0xab   : > { %p2039_p13 = pnand %p2037_p11, %p2627_p1  ;;  %p2044_p5 = por %p2043_p10, %p2042_p4 }
  0xad   : > { %p2040_p3 = pneg %p2039_p13  ;;  %p2046_p9 = por %p2045_p7, %p2044_p5 }
  0xaf   : > { %p2047_p0 = pnand %p2046_p9, %p2040_p3 }
  0xb1   : > { %2050 = shalt.err (!%p2047_p0)
}
  0xb2   : > { %s2051_s1 = scalar_lea.vmem %s2664_s25, 128  ;;  %s2356_s9 = smov [#allocation9]  }
  0xb3   : > { %p2052_p2 = scmp.ne.s32.totalorder %s2664_s25, %s2051_s1  ;;  %s2056_s15 = sshll.u32 %s2356_s9, 4  ;;  %s2057_s15 = int_to_ptr.vmem [resolvable:$false] %s2056_s15 }
  0xb4   : > { %s2058_s6 = scalar_lea.vmem %s2057_s15, 256  ;;  %p2059_p11 = scmp.lt.s32.totalorder %s2664_s25, %s2057_s15 }
  0xb5   : > { %p2054_p8 = pnand %p2052_p2, %p2627_p1  ;;  %p2060_p13 = scmp.lt.s32.totalorder %s2058_s6, %s2051_s1 }
  0xb7   : > { %p2055_p6 = pneg %p2054_p8  ;;  %p2061_p4 = por %p2060_p13, %p2059_p11 }
  0xb9   : > { %p2062_p10 = pnand %p2061_p4, %p2055_p6 }
  0xbb   : > { %2065 = shalt.err (!%p2062_p10)
}
  0xbc   : > { %1800 = dma.hbm_to_vmem [thread:$0]  (!%p2602_p12), %s2660_s14, 128, %s2664_s25, %s478_s17, %s3100_s29, %s3100_s29, %s3099_s7  }
  0xbd   : > { %s2357_s19 = smov [#allocation17]   ;;  %s2358_s13 = smov [#allocation20]  }
  0xbe   : > { %s387_s5 = sshll.u32 %s2357_s19, 4  ;;  %s411_s26 = sshll.u32 %s2358_s13, 4  ;;  %s388_s5 = int_to_ptr.vmem [resolvable:$true] %s387_s5  ;;  %s412_s26 = int_to_ptr.vmem [resolvable:$true] %s411_s26 }
  0xbf   : > { %s2066_s9 = scalar_lea.hbm %s3037_s8, 16  ;;  %p3105_p5 = scmp.ne.s32.totalorder %s3089_s11, 0 }
  0xc0   : > { %p2067_p3 = scmp.ne.s32.totalorder %s3037_s8, %s2066_s9  ;;  %p2073_p0 = scmp.lt.u32.totalorder %s2066_s9, %s3037_s8 }
  0xc2   : > { %p2069_p7 = pnand %p2067_p3, %p3105_p5 }
  0xc4   : > { %p2070_p9 = pneg %p2069_p7 }
  0xc6   : > { %p2075_p2 = pnand %p2073_p0, %p2070_p9 }
  0xc8   : > { %2078 = shalt.err (!%p2075_p2)
}
  0xc9   : > { %s2079_s25 = scalar_lea.vmem %s388_s5, 16  ;;  %s2086_s7 = scalar_lea.vmem %s388_s5, 32 }
  0xca   : > { %p2080_p8 = scmp.ne.s32.totalorder %s388_s5, %s2079_s25  ;;  %p2087_p13 = scmp.lt.s32.totalorder %s388_s5, %s388_s5 }
  0xcb   : > { %p2088_p4 = scmp.lt.s32.totalorder %s2086_s7, %s2079_s25 }
  0xcc   : > { %p2082_p6 = pnand %p2080_p8, %p3105_p5 }
  0xcd   : > { %p2089_p10 = por %p2088_p4, %p2087_p13 }
  0xce   : > { %p2083_p11 = pneg %p2082_p6 }
  0xd0   : > { %p2090_p12 = pnand %p2089_p10, %p2083_p11 }
  0xd2   : > { %2093 = shalt.err (!%p2090_p12)
}
  0xd3   : > { %p3106_p3 = scmp.ne.s32.totalorder %s3087_s30, 0  ;;  %s2094_s19 = scalar_lea.hbm %s3039_s10, 16 }
  0xd4   : > { %p2095_p7 = scmp.ne.s32.totalorder %s3039_s10, %s2094_s19  ;;  %p2101_p12 = scmp.lt.u32.totalorder %s2094_s19, %s3039_s10 }
  0xd5   : > { %1781 = dma.hbm_to_vmem [thread:$0]  (!%p3106_p3), %s3037_s8, 16, %s388_s5, [#allocation16]  }
  0xd6   : > { %p2097_p9 = pnand %p2095_p7, %p3105_p5 }
  0xd8   : > { %p2098_p0 = pneg %p2097_p9 }
  0xda   : > { %p2103_p2 = pnand %p2101_p12, %p2098_p0 }
  0xdc   : > { %2106 = shalt.err (!%p2103_p2)
}
  0xdd   : > { %s2107_s15 = scalar_lea.vmem %s412_s26, 16  ;;  %s2114_s5 = scalar_lea.vmem %s412_s26, 32 }
  0xde   : > { %p2108_p8 = scmp.ne.s32.totalorder %s412_s26, %s2107_s15  ;;  %p2115_p13 = scmp.lt.s32.totalorder %s412_s26, %s412_s26 }
  0xdf   : > { %p2116_p4 = scmp.lt.s32.totalorder %s2114_s5, %s2107_s15 }
  0xe0   : > { %p2110_p6 = pnand %p2108_p8, %p3105_p5 }
  0xe1   : > { %p2117_p10 = por %p2116_p4, %p2115_p13 }
  0xe2   : > { %p2111_p11 = pneg %p2110_p6 }
  0xe4   : > { %p2118_p1 = pnand %p2117_p10, %p2111_p11 }
  0xe6   : > { %2121 = shalt.err (!%p2118_p1)
}
  0xe7   : > { %1787 = dma.hbm_to_vmem [thread:$0]  (!%p3106_p3), %s3039_s10, 16, %s412_s26, [#allocation19]  }
  0xe8   : > { %s1550_s7 = sshll.u32 %s2344_s21, 4  ;;  %s425_s3 = scalar_lea.vmem [#allocation3], %s2595_s24 }
  0xe9   : > { %s2733_s14 = scalar_lea.hbm %s3029_s0, %s1550_s7  ;;  %s432_s30 = sshll.u32 %s425_s3, 4  ;;  %s2736_s30 = int_to_ptr.vmem [resolvable:$true] %s432_s30 }
  0xea   : > { %s2741_s13 = scalar_lea.hbm %s3031_s2, %s1550_s7  ;;  %s423_s26 = scalar_lea.sflag [#allocation4], %s2595_s24 }
  0xeb   : > { %s2122_s16 = scalar_lea.hbm %s2733_s14, 16  ;;  %p3107_p5 = scmp.ne.s32.totalorder %s3098_s20, 0 }
  0xec   : > { %p2123_p1 = scmp.ne.s32.totalorder %s2733_s14, %s2122_s16  ;;  %s2127_s15 = scalar_lea.hbm %s3029_s0, 32 }
  0xed   : > { %p2128_p9 = scmp.lt.u32.totalorder %s2733_s14, %s3029_s0  ;;  %p2129_p0 = scmp.lt.u32.totalorder %s2127_s15, %s2122_s16 }
  0xee   : > { %p2125_p3 = pnand %p2123_p1, %p3107_p5  ;;  %p2131_p2 = scmp.lt.u32.totalorder %s2122_s16, %s2733_s14 }
  0xef   : > { %p2130_p12 = por %p2129_p0, %p2128_p9 }
  0xf0   : > { %p2126_p7 = pneg %p2125_p3 }
  0xf1   : > { %p2132_p8 = por %p2131_p2, %p2130_p12 }
  0xf3   : > { %p2133_p6 = pnand %p2132_p8, %p2126_p7 }
  0xf5   : > { %2136 = shalt.err (!%p2133_p6)
}
  0xf6   : > { %s2137_s25 = scalar_lea.vmem %s2736_s30, 16  ;;  %s2359_s7 = smov [#allocation3]  }
  0xf7   : > { %p2138_p11 = scmp.ne.s32.totalorder %s2736_s30, %s2137_s25  ;;  %s2142_s11 = sshll.u32 %s2359_s7, 4  ;;  %s2143_s11 = int_to_ptr.vmem [resolvable:$false] %s2142_s11 }
  0xf8   : > { %s2144_s29 = scalar_lea.vmem %s2143_s11, 32  ;;  %p2145_p10 = scmp.lt.s32.totalorder %s2736_s30, %s2143_s11 }
  0xf9   : > { %p2140_p13 = pnand %p2138_p11, %p3107_p5  ;;  %p2146_p1 = scmp.lt.s32.totalorder %s2144_s29, %s2137_s25 }
  0xfb   : > { %p2141_p4 = pneg %p2140_p13  ;;  %p2147_p3 = por %p2146_p1, %p2145_p10 }
  0xfd   : > { %p2148_p9 = pnand %p2147_p3, %p2141_p4 }
  0xff   : > { %2151 = shalt.err (!%p2148_p9)
}
 0x100   : > { %p3108_p7 = scmp.ne.s32.totalorder %s3095_s12, 0  ;;  %s1558_s3 = sshll.u32 %s2595_s24, 4 }
 0x101   : > { %s463_s22 = scalar_lea.vmem [#allocation8], %s2595_s24  ;;  %s1623_s16 = sshll.u32 %s2344_s21, 8 }
 0x102   : > { %1791 = dma.hbm_to_vmem [thread:$0]  (!%p3108_p7), %s2733_s14, 16, %s2736_s30, %s423_s26  }
 0x103   : > { %s470_s19 = sshll.u32 %s463_s22, 4  ;;  %s2152_s1 = scalar_lea.hbm %s2741_s13, 16  ;;  %s471_s19 = int_to_ptr.vmem [resolvable:$true] %s470_s19 }
 0x104   : > { %p2153_p0 = scmp.ne.s32.totalorder %s2741_s13, %s2152_s1  ;;  %s2157_s5 = scalar_lea.hbm %s3031_s2, 32 }
 0x105   : > { %p2158_p8 = scmp.lt.u32.totalorder %s2741_s13, %s3031_s2  ;;  %p2159_p6 = scmp.lt.u32.totalorder %s2157_s5, %s2152_s1 }
 0x106   : > { %p2155_p12 = pnand %p2153_p0, %p3107_p5  ;;  %p2161_p13 = scmp.lt.u32.totalorder %s2152_s1, %s2741_s13 }
 0x107   : > { %p2160_p11 = por %p2159_p6, %p2158_p8 }
 0x108   : > { %p2156_p2 = pneg %p2155_p12 }
 0x109   : > { %p2162_p4 = por %p2161_p13, %p2160_p11 }
 0x10b   : > { %p2163_p10 = pnand %p2162_p4, %p2156_p2 }
 0x10d   : > { %2166 = shalt.err (!%p2163_p10)
}
 0x10e   : > { %s2167_s14 = scalar_lea.vmem %s471_s19, 16  ;;  %s2360_s30 = smov [#allocation8]  }
 0x10f   : > { %p2168_p1 = scmp.ne.s32.totalorder %s471_s19, %s2167_s14  ;;  %s2172_s26 = sshll.u32 %s2360_s30, 4  ;;  %s2173_s26 = int_to_ptr.vmem [resolvable:$false] %s2172_s26 }
 0x110   : > { %s2174_s7 = scalar_lea.vmem %s2173_s26, 32  ;;  %p2175_p0 = scmp.lt.s32.totalorder %s471_s19, %s2173_s26 }
 0x111   : > { %p2170_p3 = pnand %p2168_p1, %p3107_p5  ;;  %p2176_p12 = scmp.lt.s32.totalorder %s2174_s7, %s2167_s14 }
 0x113   : > { %p2171_p9 = pneg %p2170_p3  ;;  %p2177_p7 = por %p2176_p12, %p2175_p0 }
 0x115   : > { %p2178_p6 = pnand %p2177_p7, %p2171_p9 }
 0x117   : > { %2181 = shalt.err (!%p2178_p6)
}
 0x118   : > { %p3109_p8 = scmp.ne.s32.totalorder %s3095_s12, 0  ;;  %s3110_s11 = scalar_lea.sflag [#allocation7], %s2600_s28 }
 0x119   : > { %s2792_s1 = scalar_lea.hbm %s3033_s4, %s1623_s16  ;;  %s502_s9 = scalar_lea.vmem [#allocation11], %s1558_s3 }
 0x11a   : > { %1797 = dma.hbm_to_vmem [thread:$0]  (!%p3109_p8), %s2741_s13, 16, %s471_s19, %s3110_s11  }
 0x11b   : > { %s511_s15 = sshll.u32 %s502_s9, 4  ;;  %s2182_s5 = scalar_lea.hbm %s2792_s1, 256  ;;  %s2796_s15 = int_to_ptr.vmem [resolvable:$true] %s511_s15 }
 0x11c   : > { %p2183_p7 = scmp.ne.s32.totalorder %s2792_s1, %s2182_s5  ;;  %s2187_s6 = scalar_lea.hbm %s3033_s4, 512 }
 0x11d   : > { %p2188_p13 = scmp.lt.u32.totalorder %s2792_s1, %s3033_s4  ;;  %p2189_p4 = scmp.lt.u32.totalorder %s2187_s6, %s2182_s5 }
 0x11e   : > { %p2185_p2 = pnand %p2183_p7, %p3107_p5  ;;  %p2191_p1 = scmp.lt.u32.totalorder %s2182_s5, %s2792_s1 }
 0x11f   : > { %p2190_p10 = por %p2189_p4, %p2188_p13 }
 0x120   : > { %p2186_p11 = pneg %p2185_p2 }
 0x121   : > { %p2192_p3 = por %p2191_p1, %p2190_p10 }
 0x123   : > { %p2193_p9 = pnand %p2192_p3, %p2186_p11 }
 0x125   : > { %2196 = shalt.err (!%p2193_p9)
}
 0x126   : > { %s2197_s30 = scalar_lea.vmem %s2796_s15, 256  ;;  %s2361_s26 = smov [#allocation11]  }
 0x127   : > { %p2198_p0 = scmp.ne.s32.totalorder %s2796_s15, %s2197_s30  ;;  %s2202_s7 = sshll.u32 %s2361_s26, 4  ;;  %s2203_s7 = int_to_ptr.vmem [resolvable:$false] %s2202_s7 }
 0x128   : > { %s2204_s11 = scalar_lea.vmem %s2203_s7, 512  ;;  %p2205_p7 = scmp.lt.s32.totalorder %s2796_s15, %s2203_s7 }
 0x129   : > { %p2200_p12 = pnand %p2198_p0, %p3107_p5  ;;  %p2206_p2 = scmp.lt.s32.totalorder %s2204_s11, %s2197_s30 }
 0x12b   : > { %p2201_p6 = pneg %p2200_p12  ;;  %p2207_p13 = por %p2206_p2, %p2205_p7 }
 0x12d   : > { %p2208_p4 = pnand %p2207_p13, %p2201_p6 }
 0x12f   : > { %2211 = shalt.err (!%p2208_p4)
}
 0x130   : > { %s2362_s29 = smov 128   ;;  %s2363_s22 = smov 8  }
 0x131   : > { %1803 = dma.hbm_to_vmem [thread:$0]  (!%p3109_p8), %s2792_s1, 256, %s2796_s15, %s478_s17, %s2362_s29, %s2362_s29, %s2363_s22  }
 0x132   : > { %s3111_s13 = sld [smem:[#allocation41_spill]]  ;;  %s525_s6 = scalar_lea.vmem [#allocation12], %s1558_s3 }
 0x133   : > { %s534_s25 = sshll.u32 %s525_s6, 4  ;;  %s522_s14 = scalar_lea.sflag [#allocation13], %s2600_s28  ;;  %s2833_s25 = int_to_ptr.vmem [resolvable:$true] %s534_s25 }
 0x138   : > { %s2829_s19 = scalar_lea.hbm %s3111_s13, %s1623_s16  ;;  %s2217_s16 = scalar_lea.hbm %s3111_s13, 512 }
 0x139   : > { %s2212_s30 = scalar_lea.hbm %s2829_s19, 256  ;;  %p2218_p3 = scmp.lt.u32.totalorder %s2829_s19, %s3111_s13 }
 0x13a   : > { %p2213_p11 = scmp.ne.s32.totalorder %s2829_s19, %s2212_s30  ;;  %p2219_p9 = scmp.lt.u32.totalorder %s2217_s16, %s2212_s30 }
 0x13b   : > { %p2221_p12 = scmp.lt.u32.totalorder %s2212_s30, %s2829_s19 }
 0x13c   : > { %p2215_p10 = pnand %p2213_p11, %p3107_p5  ;;  %p2220_p0 = por %p2219_p9, %p2218_p3 }
 0x13e   : > { %p2216_p1 = pneg %p2215_p10  ;;  %p2222_p6 = por %p2221_p12, %p2220_p0 }
 0x140   : > { %p2223_p7 = pnand %p2222_p6, %p2216_p1 }
 0x142   : > { %2226 = shalt.err (!%p2223_p7)
}
 0x143   : > { %s2227_s3 = scalar_lea.vmem %s2833_s25, 256  ;;  %s2364_s26 = smov [#allocation12]  }
 0x144   : > { %p2228_p2 = scmp.ne.s32.totalorder %s2833_s25, %s2227_s3  ;;  %s2232_s7 = sshll.u32 %s2364_s26, 4  ;;  %s2233_s7 = int_to_ptr.vmem [resolvable:$false] %s2232_s7 }
 0x145   : > { %s2234_s11 = scalar_lea.vmem %s2233_s7, 512  ;;  %p2235_p11 = scmp.lt.s32.totalorder %s2833_s25, %s2233_s7 }
 0x146   : > { %p2230_p13 = pnand %p2228_p2, %p3107_p5  ;;  %p2236_p10 = scmp.lt.s32.totalorder %s2234_s11, %s2227_s3 }
 0x148   : > { %p2231_p4 = pneg %p2230_p13  ;;  %p2237_p3 = por %p2236_p10, %p2235_p11 }
 0x14a   : > { %p2238_p9 = pnand %p2237_p3, %p2231_p4 }
 0x14c   : > { %2241 = shalt.err (!%p2238_p9)
}
 0x14d   : > { %1806 = dma.hbm_to_vmem [thread:$0]  (!%p3109_p8), %s2829_s19, 256, %s2833_s25, %s522_s14, %s2362_s29, %s2362_s29, %s2363_s22  }
 0x14e   : > { %s3112_s20 = sld [smem:[#allocation36_spill]] }
 0x154   : > { %p3113_p5 = scmp.ne.s32.totalorder %s3112_s20, 0 }
 0x155   : > { %s3114_s9 = sld [smem:[#allocation34_spill]] (!%p3113_p5)  ;;  %s2865_s5 = sand.u32 (!%p3113_p5), 1, %s2332_s18  }
 0x156   : > { %546 = sbr.rel (%p3113_p5) target bundleno = 1494 (0x5d6), region = 64  ;;  %s549_s6 = scalar_lea.sflag (!%p3113_p5), [#allocation4], %s2865_s5 }
 0x157   : > { %s551_s30 = scalar_lea.vmem (!%p3113_p5), [#allocation3], %s2865_s5 }
 0x15b   : > { %p3115_p1 = scmp.ne.s32.totalorder (!%p3113_p5), %s3114_s9, 0 }
 0x15d   : > { %2295 = dma.done.wait (%p3115_p1), %s549_s6, 16  }
 0x15e   : > { %2297 = vsyncadd (%p3115_p1), %s549_s6, 4294967280  ;;  %s556_s28 = sand.u32 1, %s2462_s23   ;;  %s1565_s12 = sshll.u32 %s2865_s5, 3 }
 0x15f   : > { %s557_s29 = scalar_lea.sflag [#allocation7], %s556_s28  ;;  %s560_s22 = scalar_lea.vmem [#allocation6], %s1565_s12 }
 0x160   : > { %2299 = dma.done.wait (%p3115_p1), %s557_s29, 144  }
 0x161   : > { %2301 = vsyncadd (%p3115_p1), %s557_s29, 4294967152  ;;  %s568_s19 = scalar_lea.vmem [#allocation8], %s2865_s5  ;;  %s574_s25 = scalar_lea.sflag [#allocation10], %s556_s28 }
 0x162   : > { %s2880_s14 = scalar_lea.vmem [#allocation9], %s1565_s12 }
 0x163   : > { %2303 = dma.done.wait (%p3115_p1), %s574_s25, 384  }
 0x164   : > { %2305 = vsyncadd (%p3115_p1), %s574_s25, 4294966912  ;;  %s2887_s17 = sshll.u32 %s2865_s5, 4  ;;  %s592_s16 = scalar_lea.sflag [#allocation13], %s556_s28 }
 0x165   : > { %s586_s1 = scalar_lea.vmem [#allocation11], %s2887_s17  ;;  %s595_s15 = scalar_lea.vmem [#allocation12], %s2887_s17 }
 0x166   : > { %2307 = dma.done.wait (%p3115_p1), %s592_s16, 256  }
 0x167   : > { %2309 = vsyncadd (%p3115_p1), %s592_s16, 4294967040  ;;  %p3116_p8 = scmp.eq.s32.totalorder %s2462_s23, 0 }
 0x169   : > { %2311 = dma.done.wait (%p3116_p8), [#allocation13], 1024   ;;  %p3117_p0 = pmov %p3116_p8 }
 0x16b   : > { %2313 = vsyncadd (%p3117_p0), [#allocation13], 4294966272  ;;  %p3118_p12 = pmov %p3117_p0 }
 0x16c   : > { %p3119_p6 = pmov %p3117_p0 }
 0x16d   : > { %2315 = dma.done.wait (%p3118_p12), [#allocation16], 1040  }
 0x16e   : > { %2317 = vsyncadd (%p3119_p6), [#allocation16], 4294966256  ;;  %p3120_p7 = pmov %p3117_p0 }
 0x16f   : > { %p3121_p2 = pmov %p3117_p0 }
 0x170   : > { %2319 = dma.done.wait (%p3120_p7), [#allocation19], 1040  }
 0x171   : > { %2321 = vsyncadd (%p3121_p2), [#allocation19], 4294966256  ;;  %v689_v0 = vlaneseq  ;;  %v2365_v1 = vmov 0.0   ;;  %vm2366_vm0 = vmmov 0   ;;  %v1887_v4 = vld [vmem:[%s560_s22] sm:$0xff]   ;;  %vm707_vm5 = vcmask 130048  }
 0x172   : > { %1660 = vmatprep.subr.bf16.mxu0 %v2365_v1  ;;  %1662 = vmatprep.mubr.msk.bf16.mxu0 %vm2366_vm0, %v2365_v1  ;;  %v1575_v5 = vld [vmem:[%s551_s30] ss:$0 sm:$0xff]  ;;  %v2367_v14 = vmov 0   ;;  %v858_v15 = vld [vmem:[%s586_s1] sm:$0xff]  ;;  %v1891_v49 = vld [vmem:[#allocation15 + $0x8] sm:$0xff]   ;;  %s3122_s23 = sld [smem:[#allocation32_spill]] }
 0x173   : > { %v690_v2 = vshrl.u32 %v689_v0, 7  ;;  %1678 = vmatprep.subr.bf16.mxu1 %v2365_v1  ;;  %1694 = vmatprep.mubr.msk.bf16.mxu1 %vm2366_vm0, %v2365_v1  ;;  %v788_v11 = vld [vmem:[%s2880_s14] sm:$0xff]   ;;  %v860_v19 = vld [vmem:[%s595_s15] sm:$0xff]  ;;  %v863_v42 = vand.u32 127, %v689_v0  ;;  %v1899_v53 = vld [vmem:[#allocation15 + $0x28] sm:$0xff]   ;;  %s676_s24 = scalar_lea.vmem [#allocation21], %s2887_s17 }
 0x174   : > { %1661 = vmatpush3.bf16.msra.mxu0 %v1887_v4  ;;  %v790_v12 = vunpack.c.l.bf16 %v788_v11  ;;  %v791_v13 = vunpack.c.h.bf16 %v788_v11  ;;  %1886 = vset.pattern.permute.xlu1 %v2367_v14  ;;  %v859_v18 = vld [vmem:[%s586_s1 + $0x8] sm:$0xff]  ;;  %v1889_v48 = vld [vmem:[#allocation15] sm:$0xff]   ;;  %v1893_v50 = vld [vmem:[#allocation15 + $0x10] sm:$0xff]   ;;  %s1301_s3 = sshll.u32 %s676_s24, 4  ;;  %s3123_s20 = sld [smem:[#allocation45_spill]]  ;;  %s2975_s3 = int_to_ptr.vmem [resolvable:$true] %s1301_s3 }
 0x175   : > { %v691_v3 = vadd.s32 8, %v690_v2  ;;  %vm698_vm1 = vcmp.ge.s32.totalorder %v690_v2, 1  ;;  %vm696_vm2 = vcmp.eq.s32.totalorder %v690_v2, %v1575_v5  ;;  %1666 = vmatprep.subr.bf16.mxu0 %v2365_v1  ;;  %1885 = vset.pattern.permute.xlu0 %v2367_v14  ;;  %v861_v20 = vld [vmem:[%s595_s15 + $0x8] sm:$0xff]  ;;  %vm772_vm8 = vcmp.eq.s32.totalorder %v690_v2, 0  ;;  %v1897_v52 = vld [vmem:[#allocation15 + $0x20] sm:$0xff]   ;;  %v1901_v54 = vld [vmem:[#allocation15 + $0x30] sm:$0xff]  }
 0x176   : > { %vm700_vm4 = vmand %vm696_vm2, %vm698_vm1  ;;  %v792_v16 = vsel %vm707_vm5, %v790_v12, 0.0  ;;  %v795_v17 = vsel %vm707_vm5, %v791_v13, 0.0  ;;  %v1581_v25 = vld [vmem:[%s568_s19] ss:$0 sm:$0xff]  ;;  %v1580_v26 = vsel %vm772_vm8, 1.0, %v2365_v1  ;;  %1679 = vmatpush3.bf16.msra.mxu1 %v1889_v48  ;;  %v1898_v12 = vld [vmem:[#allocation14 + $0x20] sm:$0xff]  }
 0x177   : > { %vm697_vm3 = vcmp.eq.s32.totalorder %v691_v3, %v1575_v5  ;;  %v1576_v7 = vsel %vm700_vm4, 1.0, %v2365_v1  ;;  %793 = vadd.xlane.f32.xlu1 %v792_v16  ;;  %v784_v31 = vmul.f32 %v1581_v25, %v1580_v26  ;;  %v785_v33 = vmul.f32 0.0, %v1581_v25  ;;  %1680 = vmatprep.subr.bf16.mxu1 %v2365_v1  ;;  %v1895_v51 = vld [vmem:[#allocation15 + $0x18] sm:$0xff]   ;;  %v1900_v13 = vld [vmem:[#allocation14 + $0x28] sm:$0xff]   ;;  %v1902_v14 = vld [vmem:[#allocation14 + $0x30] sm:$0xff]   ;;  %s1286_s30 = scalar_lea.sflag [#allocation5], %s2865_s5 }
 0x178   : > { %v1577_v6 = vsel %vm697_vm3, 1.0, %v2365_v1  ;;  %v708_v9 = vsel %vm707_vm5, %v1576_v7, 0.0  ;;  %v1904_v16 = vld [vmem:[#allocation14 + $0x38] sm:$0xff]   ;;  %s1625_s26 = sshll.u32 %s3122_s23, 8  ;;  %s2242_s28 = scalar_lea.vmem %s2975_s3, 256 }
 0x179   : > { %v706_v8 = vpack.c.bf16 %v1577_v6, %v1576_v7  ;;  %v711_v10 = vsel %vm707_vm5, %v1577_v6, 0.0  ;;  %709 = vadd.xlane.f32.xlu0 %v708_v9  ;;  %v1890_v7 = vld [vmem:[#allocation14] sm:$0xff]   ;;  %v1892_v9 = vld [vmem:[#allocation14 + $0x8] sm:$0xff]   ;;  %v1907_v25 = vld [vmem:[#allocation18 + $0x10] sm:$0xff]   ;;  %p2243_p13 = scmp.ne.s32.totalorder %s2975_s3, %s2242_s28  ;;  %p3125_p4 = scmp.ne.s32.totalorder %s3093_s27, 0 }
 0x17a   : > { %1681 = vmatpush3.bf16.msra.mxu1 %v1891_v49  ;;  %v1908_v26 = vld [vmem:[#allocation18 + $0x18] sm:$0xff]   ;;  %s3124_s9 = smov %s3123_s20  ;;  %s2980_s6 = scalar_lea.hbm %s3123_s20, %s1625_s26 }
 0x17b   : > { %1663 = vmatmul.mubr.msk.bf16.vlgmr.msra.gmra.mrb[0].mxu0 %vm707_vm5, %v706_v8  ;;  %796 = vadd.xlane.f32.xlu1 %v795_v17  ;;  %p2244_p11 = pnand %p2243_p13, %p3125_p4  ;;  %s2368_s12 = smov [#allocation21]  }
 0x17c   : > { %1668 = vmatprep.mubr.msk.bf16.mxu0 %vm2366_vm0, %v2365_v1  ;;  %1682 = vmatprep.subr.bf16.mxu1 %v2365_v1  ;;  %s2246_s29 = sshll.u32 %s2368_s12, 4  ;;  %s2247_s29 = int_to_ptr.vmem [resolvable:$false] %s2246_s29 }
 0x17d   : > { %712 = vadd.xlane.f32.xlu0 %v711_v10  ;;  %v1894_v10 = vld [vmem:[#allocation14 + $0x10] sm:$0xff]   ;;  %p2245_p10 = pneg %p2244_p11  ;;  %s2248_s22 = scalar_lea.vmem %s2247_s29, 512 }
 0x17e   : > { %1683 = vmatpush3.bf16.msra.mxu1 %v1893_v50  ;;  %p2249_p3 = scmp.lt.s32.totalorder %s2975_s3, %s2247_s29  ;;  %p2250_p9 = scmp.lt.s32.totalorder %s2248_s22, %s2242_s28 }
 0x17f   : > { %1684 = vmatprep.subr.bf16.mxu1 %v2365_v1 }
 0x180   : > { %p2251_p5 = por %p2250_p9, %p2249_p3 }
 0x182   : > { %1685 = vmatpush3.bf16.msra.mxu1 %v1895_v51  ;;  %p2252_p1 = pnand %p2251_p5, %p2245_p10 }
 0x183   : > { %1686 = vmatprep.subr.bf16.mxu1 %v2365_v1 }
 0x186   : > { %1687 = vmatpush3.bf16.msra.mxu1 %v1897_v52 }
 0x187   : > { %1688 = vmatprep.subr.bf16.mxu1 %v2365_v1 }
 0x18a   : > { %1689 = vmatpush3.bf16.msra.mxu1 %v1899_v53 }
 0x18b   : > { %1690 = vmatprep.subr.bf16.mxu1 %v2365_v1 }
 0x18c   : > { %868 = vperm.xlu1 %1886, %v859_v18  }
 0x18e   : > { %1691 = vmatpush3.bf16.msra.mxu1 %v1901_v54 }
 0x18f   : > { %1692 = vmatprep.subr.bf16.mxu1 %v2365_v1 }
 0x190   : > { %878 = vperm.xlu1 %1886, %v860_v19  }
 0x193   : > { %865 = vperm.xlu0 %1885, %v858_v15   ;;  %v1903_v15 = vld [vmem:[#allocation15 + $0x38] sm:$0xff]  }
 0x194   : > { %881 = vperm.xlu1 %1886, %v861_v20   ;;  %1693 = vmatpush3.bf16.msra.mxu1 %v1903_v15  ;;  %v1905_v20 = vld [vmem:[#allocation18] sm:$0xff]  }
 0x195   : > { %1718 = vmatprep.subr.bf16.mxu1 %v2365_v1 }
 0x204   : > { %v794_v40 = vpop.xlane.xlu1 %793 }
 0x205   : > { %vm798_vm11 = vcmp.gt.f32.partialorder %v794_v40, 0.0 }
 0x206   : > { %v710_v21 = vpop.xlane.xlu0 %709  ;;  %v800_v55 = vsel %vm798_vm11, %v794_v40, 1.0 }
 0x207   : > { %vm714_vm6 = vcmp.gt.f32.partialorder %v710_v21, 0.0 }
 0x208   : > { %v716_v23 = vsel %vm714_vm6, %v710_v21, 1.0  ;;  %v797_v41 = vpop.xlane.xlu1 %796 }
 0x209   : > { %1914 = vrcp.f32 %v716_v23  ;;  %vm799_vm12 = vcmp.gt.f32.partialorder %v797_v41, 0.0 }
 0x20a   : > { %v713_v22 = vpop.xlane.xlu0 %712  ;;  %v801_v56 = vsel %vm799_vm12, %v797_v41, 1.0 }
 0x20b   : > { %vm715_vm7 = vcmp.gt.f32.partialorder %v713_v22, 0.0 }
 0x20c   : > { %v717_v24 = vsel %vm715_vm7, %v713_v22, 1.0  ;;  %v869_v43 = vpop.permute.xlu1 %868 }
 0x20d   : > { %1916 = vrcp.f32 %v717_v24  ;;  %vm871_vm9 = vcmp.eq.s32.totalorder %v863_v42, %v869_v43  ;;  %v1906_v24 = vld [vmem:[#allocation18 + $0x8] sm:$0xff]  }
 0x20e   : > { %v1585_v44 = vsel %vm871_vm9, 1.0, %v2365_v1  ;;  %1918 = vrcp.f32 %v800_v55 }
 0x20f   : > { %1920 = vrcp.f32 %v801_v56 }
 0x210   : > { %v879_v57 = vpop.permute.xlu1 %878 }
 0x211   : > { %vm883_vm13 = vcmp.eq.s32.totalorder %v863_v42, %v879_v57 }
 0x212   : > { %v866_v45 = vpop.permute.xlu0 %865  ;;  %v1586_v5 = vsel %vm883_vm13, 1.0, %v2365_v1 }
 0x213   : > { %v1915_v27 = vpop.eup %1914  ;;  %vm870_vm10 = vcmp.eq.s32.totalorder %v863_v42, %v866_v45 }
 0x214   : > { %v1584_v46 = vsel %vm870_vm10, 1.0, %v2365_v1  ;;  %v882_v61 = vpop.permute.xlu1 %881 }
 0x215   : > { %v876_v47 = vpack.c.bf16 %v1585_v44, %v1584_v46  ;;  %vm884_vm14 = vcmp.eq.s32.totalorder %v863_v42, %v882_v61  ;;  %v1607_v46 = vld [vmem:[#allocation20] ss:$0 sm:$0xff] }
 0x216   : > { %v1587_v6 = vsel %vm884_vm14, 1.0, %v2365_v1 }
 0x217   : > { %v1917_v28 = vpop.eup %1916  ;;  %v889_v8 = vpack.c.bf16 %v1587_v6, %v1586_v5 }
 0x218   : > { %v1919_v58 = vpop.eup %1918 }
 0x219   : > { %v1921_v59 = vpop.eup %1920 }
 0x24e   : > { %v763_v29 = vpop.f32.mrb[0].mxu0 }
 0x24f   : > { %v770_v30 = vmul.f32 %v1915_v27, %v763_v29  ;;  %v1664_v32 = vpop.f32.mrb[1].mxu0  ;;  %v1909_v27 = vld [vmem:[#allocation18 + $0x20] sm:$0xff]   ;;  %v1911_v29 = vld [vmem:[#allocation18 + $0x30] sm:$0xff]  }
 0x250   : > { %v766_v34 = vpop.f32.mrb[2].mxu0 }
 0x251   : > { %v771_v35 = vmul.f32 %v1917_v28, %v766_v34  ;;  %v1665_v36 = vpop.f32.mrb[3].mxu0  ;;  %v786_v37 = vadd.f32 %v784_v31, %v770_v30  ;;  %v1910_v28 = vld [vmem:[#allocation18 + $0x28] sm:$0xff]   ;;  %v1912_v30 = vld [vmem:[#allocation18 + $0x38] sm:$0xff]  }
 0x252   : > { %v1606_v34 = vld [vmem:[#allocation17] ss:$0 sm:$0xff] }
 0x253   : > { %v787_v38 = vadd.f32 %v785_v33, %v771_v35 }
 0x255   : > { %v804_v39 = vpack.c.bf16 %v787_v38, %v786_v37 }
 0x257   : > { %1667 = vmatpush3.bf16.msra.mxu0 %v804_v39 }
 0x25a   : > { %1669 = vmatmul.mubr.msk.bf16.vlgmr.msra.gmra.mrb[4].mxu0 %vm707_vm5, %v788_v11  ;;  %v1896_v11 = vld [vmem:[#allocation14 + $0x18] sm:$0xff]  }
 0x25b   : > { %1674 = vmatprep.mubr.msk.bf16.mxu0 %vm707_vm5, %v876_v47 }
 0x32d   : > { %v847_v60 = vpop.f32.mrb[4].mxu0 }
 0x32e   : > { %v854_v62 = vmul.f32 %v1919_v58, %v847_v60  ;;  %v1670_v63 = vpop.f32.mrb[5].mxu0 }
 0x32f   : > { %v850_v0 = vpop.f32.mrb[6].mxu0 }
 0x330   : > { %v855_v2 = vmul.f32 %v1921_v59, %v850_v0  ;;  %v1671_v3 = vpop.f32.mrb[7].mxu0 }
 0x332   : > { %v856_v4 = vpack.c.bf16 %v855_v2, %v854_v62 }
 0x334   : > { %1672 = vmatprep.subr.bf16.mxu0 %v856_v4 }
 0x335   : > { %1673 = vmatpush3.bf16.msra.mxu0 %v856_v4 }
 0x336   : > { %1698 = vmatprep.subr.bf16.mxu0 %v2365_v1 }
 0x338   : > { %1675 = vmatmul.mubr.msk.bf16.vlgmr.msra.gmra.mrb[8].mxu0 %vm707_vm5, %v889_v8 }
 0x339   : > { %1699 = vmatpush3.bf16.msra.mxu0 %v1890_v7  ;;  %1714 = vmatprep.mubr.msk.bf16.mxu0 %vm2366_vm0, %v2365_v1 }
 0x33a   : > { %1700 = vmatprep.subr.bf16.mxu0 %v2365_v1 }
 0x33d   : > { %1701 = vmatpush3.bf16.msra.mxu0 %v1892_v9 }
 0x33e   : > { %1702 = vmatprep.subr.bf16.mxu0 %v2365_v1 }
 0x341   : > { %1703 = vmatpush3.bf16.msra.mxu0 %v1894_v10 }
 0x342   : > { %1704 = vmatprep.subr.bf16.mxu0 %v2365_v1 }
 0x345   : > { %1705 = vmatpush3.bf16.msra.mxu0 %v1896_v11 }
 0x346   : > { %1706 = vmatprep.subr.bf16.mxu0 %v2365_v1 }
 0x349   : > { %1707 = vmatpush3.bf16.msra.mxu0 %v1898_v12 }
 0x34a   : > { %1708 = vmatprep.subr.bf16.mxu0 %v2365_v1 }
 0x34d   : > { %1709 = vmatpush3.bf16.msra.mxu0 %v1900_v13 }
 0x34e   : > { %1710 = vmatprep.subr.bf16.mxu0 %v2365_v1 }
 0x351   : > { %1711 = vmatpush3.bf16.msra.mxu0 %v1902_v14 }
 0x352   : > { %1712 = vmatprep.subr.bf16.mxu0 %v2365_v1 }
 0x355   : > { %1713 = vmatpush3.bf16.msra.mxu0 %v1904_v16 }
 0x40b   : > { %v1676_v17 = vpop.f32.mrb[8].mxu0 }
 0x40c   : > { %v932_v18 = vpop.f32.mrb[9].mxu0 }
 0x40d   : > { %v1677_v19 = vpop.f32.mrb[10].mxu0 }
 0x40e   : > { %v948_v21 = vpack.c.bf16 %v1677_v19, %v1676_v17  ;;  %v935_v22 = vpop.f32.mrb[11].mxu0 }
 0x40f   : > { %v947_v23 = vpack.c.bf16 %v935_v22, %v932_v18 }
 0x410   : > { %1695 = vmatmul.mubr.bf16.vlgmr.msra.gmra.mrb[0].mxu1 %v948_v21 }
 0x411   : > { %1715 = vmatmul.mubr.bf16.vlgmr.msra.gmra.mrb[12].mxu0 %v947_v23  ;;  %1719 = vmatpush3.bf16.msra.mxu1 %v1905_v20 }
 0x412   : > { %1720 = vmatprep.subr.bf16.mxu1 %v2365_v1  ;;  %1734 = vmatprep.mubr.msk.bf16.mxu1 %vm2366_vm0, %v2365_v1 }
 0x415   : > { %1721 = vmatpush3.bf16.msra.mxu1 %v1906_v24 }
 0x416   : > { %1722 = vmatprep.subr.bf16.mxu1 %v2365_v1 }
 0x419   : > { %1723 = vmatpush3.bf16.msra.mxu1 %v1907_v25 }
 0x41a   : > { %1724 = vmatprep.subr.bf16.mxu1 %v2365_v1 }
 0x41d   : > { %1725 = vmatpush3.bf16.msra.mxu1 %v1908_v26 }
 0x41e   : > { %1726 = vmatprep.subr.bf16.mxu1 %v2365_v1 }
 0x421   : > { %1727 = vmatpush3.bf16.msra.mxu1 %v1909_v27 }
 0x422   : > { %1728 = vmatprep.subr.bf16.mxu1 %v2365_v1 }
 0x425   : > { %1729 = vmatpush3.bf16.msra.mxu1 %v1910_v28 }
 0x426   : > { %1730 = vmatprep.subr.bf16.mxu1 %v2365_v1 }
 0x429   : > { %1731 = vmatpush3.bf16.msra.mxu1 %v1911_v29 }
 0x42a   : > { %1732 = vmatprep.subr.bf16.mxu1 %v2365_v1 }
 0x42d   : > { %1733 = vmatpush3.bf16.msra.mxu1 %v1912_v30 }
 0x4e3   : > { %v1063_v31 = vpop.f32.mrb[0].mxu1 }
 0x4e4   : > { %v1696_v32 = vpop.f32.mrb[1].mxu1  ;;  %v1152_v33 = vpop.f32.mrb[12].mxu0 }
 0x4e5   : > { %v1153_v35 = vadd.f32 %v1152_v33, %v1063_v31  ;;  %v1066_v36 = vpop.f32.mrb[2].mxu1  ;;  %v1716_v37 = vpop.f32.mrb[13].mxu0 }
 0x4e6   : > { %v1697_v38 = vpop.f32.mrb[3].mxu1  ;;  %v1155_v39 = vpop.f32.mrb[14].mxu0 }
 0x4e7   : > { %v1166_v40 = vadd.f32 %v1606_v34, %v1153_v35  ;;  %v1156_v41 = vadd.f32 %v1155_v39, %v1066_v36  ;;  %v1717_v42 = vpop.f32.mrb[15].mxu0 }
 0x4e9   : > { %v1167_v43 = vadd.f32 %v1606_v34, %v1156_v41  ;;  %v1168_v44 = vmax.f32 %v1166_v40, 0.0 }
 0x4eb   : > { %v1169_v45 = vmax.f32 %v1167_v43, 0.0 }
 0x4ed   : > { %v1170_v1 = vpack.c.bf16 %v1169_v45, %v1168_v44 }
 0x4ef   : > { %1735 = vmatmul.mubr.bf16.vlgmr.msra.gmra.mrb[4].mxu1 %v1170_v1 }
 0x5c2   : > { %v1276_v47 = vpop.f32.mrb[4].mxu1 }
 0x5c3   : > { %v1277_v48 = vadd.f32 %v1607_v46, %v1276_v47  ;;  %v1736_v49 = vpop.f32.mrb[5].mxu1 }
 0x5c4   : > { %v1279_v50 = vpop.f32.mrb[6].mxu1 }
 0x5c5   : > { %1283 = vst [vmem:[%s676_s24] sm:$0xff] %v1277_v48  ;;  %v1280_v51 = vadd.f32 %v1607_v46, %v1279_v50  ;;  %v1737_v52 = vpop.f32.mrb[7].mxu1 }
 0x5c7   : > { %1284 = vst [vmem:[%s676_s24 + $0x8] sm:$0xff] %v1280_v51 }
 0x5c8   : > { %2255 = shalt.err (!%p2252_p1)
}
 0x5c9   : > { %s2256_s19 = scalar_lea.hbm %s2980_s6, 256  ;;  %s2260_s17 = scalar_lea.hbm %s3124_s9, 512 }
 0x5ca   : > { %p2257_p8 = scmp.ne.s32.totalorder %s2980_s6, %s2256_s19  ;;  %p2261_p6 = scmp.lt.u32.totalorder %s2980_s6, %s3124_s9 }
 0x5cb   : > { %p2262_p7 = scmp.lt.u32.totalorder %s2260_s17, %s2256_s19  ;;  %p2264_p13 = scmp.lt.u32.totalorder %s2256_s19, %s2980_s6 }
 0x5cc   : > { %p2258_p0 = pnand %p2257_p8, %p3125_p4 }
 0x5cd   : > { %p2263_p2 = por %p2262_p7, %p2261_p6 }
 0x5ce   : > { %p2259_p12 = pneg %p2258_p0 }
 0x5cf   : > { %p2265_p11 = por %p2264_p13, %p2263_p2 }
 0x5d1   : > { %p2266_p10 = pnand %p2265_p11, %p2259_p12 }
 0x5d3   : > { %2269 = shalt.err (!%p2266_p10)
}
 0x5d4   : > { %s2369_s15 = smov 128   ;;  %s2370_s23 = smov 8  }
 0x5d5   : > { %1770 = dma.vmem_to_hbm [thread:$0]  (%p3125_p4), %s2975_s3, 256, %s2980_s6, %s1286_s30, %s2369_s15, %s2369_s15, %s2370_s23  }
 0x5d6 PF: > { %s3126_s24 = sld [smem:[#allocation30_spill]]  ;;  %s3127_s26 = sld [smem:[#allocation35_spill]] }
 0x5d7   : > { %s3128_s7 = sld [smem:[#allocation33_spill]] }
 0x5dc   : > { %s1316_s11 = sand.u32 1, %s3126_s24   ;;  %p3129_p3 = scmp.ne.s32.totalorder %s3127_s26, 0 }
 0x5dd   : > { %p3130_p9 = scmp.ge.s32.totalorder %s3128_s7, 2  ;;  %s1317_s20 = scalar_lea.sflag [#allocation5], %s1316_s11 }
 0x5df   : > { %p1808_p5 = pnand %p3130_p9, %p3129_p3 }
 0x5e1   : > { %2323 = dma.done.wait (!%p1808_p5), %s1317_s20, 256  }
 0x5e2   : > { %2325 = vsyncadd (!%p1808_p5), %s1317_s20, 4294967040  ;;  %s38_s22 = sadd.s32 1, %s3128_s7   ;;  %s3131_s28 = sld [smem:[#allocation31_spill]] }
 0x5e3   : > { %p35_p1 = scmp.ge.s32.totalorder %s38_s22, 4   ;;  %s3132_s19 = sld [smem:[#allocation38_spill]] }
 0x5e4   : > { %s3133_s27 = sld [smem:[#allocation37_spill]]  ;;  %s3134_s17 = smov %s2332_s18 }
 0x5e5   : > { %s3136_s20 = smov %s2344_s21  ;;  %37 = sbr.rel (!%p35_p1) target bundleno = 22 (0x16), region = 194 }
 0x5e8   : > { %s3135_s18 = smov %s3131_s28 }
 0x5ea   : > { %s3137_s21 = smov %s3133_s27 }
 0x5ec   :  { %1322 = vsyncpa [#allocation4], 1 }
 0x5ed   :  { %1324 = vsyncpa [#allocation4 + $0x1], 1 }
 0x5ee   :  { %1325 = vsyncpa [#allocation7], 1 }
 0x5ef   :  { %1327 = vsyncpa [#allocation7 + $0x1], 1 }
 0x5f0   :  { %1328 = vsyncpa [#allocation10], 1 }
 0x5f1   :  { %1330 = vsyncpa [#allocation10 + $0x1], 1 }
 0x5f2   :  { %1331 = vsyncpa [#allocation13], 1 }
 0x5f3   :  { %1333 = vsyncpa [#allocation13 + $0x1], 1 }
 0x5f4   :  { %1334 = vsyncpa [#allocation16], 1 }
 0x5f5   :  { %1335 = vsyncpa [#allocation19], 1 }
 0x5f6   :  { %1336 = vsyncpa [#allocation5], 1 }
 0x5f7   :  { %1338 = vsyncpa [#allocation5 + $0x1], 1 }

</bundles_post_ra>
